<compile_context>
chip_gen: v7x
topology: tpu7x:2x2x1
jax: 0.10.0
libtpu: 0.0.40
codegen_flags: <defaults>
</compile_context>

<pallas_src>
import functools

import jax
import jax.numpy as jnp
from jax.experimental import pallas as pl
from jax.experimental.pallas import tpu as pltpu


_INV_SQRT2 = 0.7071067811865476

# Conservative budget (bytes) under which W1/W2 are kept VMEM-resident.
# Sized for v7x's 64 MiB per-TC VMEM (double-buffered weights + tiles +
# headroom for compiler scratch).  On v5e/v6e (128 MiB VMEM) this can be
# raised (e.g. to ~96 MiB) to keep ViT-L / ViT-H weights resident as well.
_RESIDENT_BUDGET_BYTES = 44 * 2**20


def _round_up(v, m):
    return ((v + m - 1) // m) * m


def _gelu_exact_f32(h):
    # torch.nn.GELU() default: exact erf-based GELU, computed in f32.
    return 0.5 * h * (1.0 + jax.lax.erf(h * _INV_SQRT2))


# ---------------------------------------------------------------------------
# Kernels
# ---------------------------------------------------------------------------

def _mlp_resident_kernel(x_ref, w1_ref, b1_ref, w2_ref, b2_ref, o_ref):
    # x_ref : (TM, D)  input dtype     w1_ref: (D, H)   bf16 (resident)
    # b1_ref: (1, H)   f32             w2_ref: (H, TD)  bf16 (resident)
    # b2_ref: (1, TD)  f32             o_ref : (TM, TD) output dtype
    x = x_ref[...].astype(jnp.bfloat16)            # per-tile cast (no wrapper pass)
    h = jnp.dot(x, w1_ref[...], preferred_element_type=jnp.float32)
    h = _gelu_exact_f32(h + b1_ref[...])
    o = jnp.dot(h.astype(jnp.bfloat16), w2_ref[...],
                preferred_element_type=jnp.float32)
    # Dropout(p=0.0) is the identity; add output bias and store directly.
    o_ref[...] = (o + b2_ref[...]).astype(o_ref.dtype)


def _mlp_stream_kernel(x_ref, w1_ref, b1_ref, w2_ref, b2_ref, o_ref, acc_ref):
    # Streaming fallback: H tiled on grid axis 1, fc2 partials accumulated
    # into a (TM, D) f32 VMEM scratch resident across the H reduction.
    h_idx = pl.program_id(1)

    @pl.when(h_idx == 0)
    def _init():
        acc_ref[...] = jnp.zeros_like(acc_ref)

    x = x_ref[...].astype(jnp.bfloat16)
    h = jnp.dot(x, w1_ref[...], preferred_element_type=jnp.float32)
    h = _gelu_exact_f32(h + b1_ref[...])
    acc_ref[...] += jnp.dot(h.astype(jnp.bfloat16), w2_ref[...],
                            preferred_element_type=jnp.float32)

    @pl.when(h_idx == pl.num_programs(1) - 1)
    def _finalize():
        o_ref[...] = (acc_ref[...] + b2_ref[...]).astype(o_ref.dtype)


# ---------------------------------------------------------------------------
# VMEM accounting (used both for the resident/stream decision and for
# right-sizing vmem_limit_bytes instead of claiming 64 MiB blindly).
# ---------------------------------------------------------------------------

def _resident_vmem_bytes(tile_m, D, H, tile_d, x_bytes, o_bytes):
    blocks = (tile_m * D * x_bytes          # x tile
              + D * H * 2                   # w1 (bf16, constant index map)
              + H * 4                       # b1 (f32)
              + H * tile_d * 2              # w2 (bf16, constant over M)
              + tile_d * 4                  # b2 (f32)
              + tile_m * tile_d * o_bytes)  # out tile
    hidden = tile_m * H * (4 + 2)           # f32 activations + bf16 copy for fc2
    return 2 * blocks + hidden              # pipeline double-buffers blocks


def _stream_vmem_bytes(tile_m, D, tile_h, x_bytes, o_bytes):
    blocks = (tile_m * D * x_bytes
              + D * tile_h * 2
              + tile_h * 4
              + tile_h * D * 2
              + D * 4
              + tile_m * D * o_bytes)
    acc = tile_m * D * 4                    # f32 accumulator scratch (single)
    hidden = tile_m * tile_h * (4 + 2)
    return 2 * blocks + acc + hidden


def _pick_tile_h(H, tile_h):
    # The H reduction must not have ragged blocks (garbage hidden columns
    # would feed the accumulation), so pick a 128-multiple that divides H.
    for cand in (tile_h, 512, 384, 256, 128):
        if cand is not None and 0 < cand <= H and H % cand == 0 and cand % 128 == 0:
            return cand
    return H   # whole-H fallback: a single reduction step


# ---------------------------------------------------------------------------
# Wrapper
# ---------------------------------------------------------------------------

def prepare_mlp_params(w1, b1, w2, b2):
    """One-time parameter prep, outside the per-call path.

    Weights are stored as (in, out) -- i.e. transposed vs. PyTorch nn.Linear --
    and cast to bf16 MXU operands; biases stay f32 row vectors (added in f32
    inside the kernel).  Doing this once avoids a per-call HBM pass over the
    weight matrices.
    """
    return (w1.astype(jnp.bfloat16),
            b1.reshape(1, -1).astype(jnp.float32),
            w2.astype(jnp.bfloat16),
            b2.reshape(1, -1).astype(jnp.float32))


@functools.partial(
    jax.jit,
    static_argnames=("tile_m", "tile_h", "tile_d", "mode", "resident_budget_bytes"))
def mlp_pallas(x, w1, b1, w2, b2, *, tile_m=512, tile_h=512, tile_d=None,
               mode="auto", resident_budget_bytes=_RESIDENT_BUDGET_BYTES):
    """x: (B, N, D).  w1: (D, H) bf16, b1: (1, H) f32, w2: (H, D) bf16,
    b2: (1, D) f32 (use prepare_mlp_params; plain f32 / 1-D biases also work,
    the casts/reshapes below are no-ops when params were pre-prepared)."""
    B, N, D = x.shape
    H = w1.shape[1]
    M = B * N
    out_dtype = x.dtype

    w1 = w1.astype(jnp.bfloat16)
    w2 = w2.astype(jnp.bfloat16)
    b1 = b1.reshape(1, H).astype(jnp.float32)
    b2 = b2.reshape(1, D).astype(jnp.float32)

    x2 = x.reshape(M, D)

    # Row tile: multiple of 128 for full MXU occupancy; clamped so the ragged
    # final block (pl.cdiv grid, no wrapper-side jnp.pad of x) wastes < 128 rows.
    tile_m = min(tile_m, max(128, _round_up(M, 128)))
    if tile_m % 8 != 0:
        raise ValueError("tile_m must be a multiple of 8 (ideally 128)")
    grid_m = pl.cdiv(M, tile_m)

    if tile_d is None:
        tile_d = D
    if tile_d != D and tile_d % 128 != 0:
        raise ValueError("tile_d must equal D or be a multiple of 128")
    grid_d = pl.cdiv(D, tile_d)

    x_bytes = x2.dtype.itemsize
    o_bytes = jnp.dtype(out_dtype).itemsize

    resident_est = _resident_vmem_bytes(tile_m, D, H, tile_d, x_bytes, o_bytes)
    if mode == "auto":
        use_resident = resident_est <= resident_budget_bytes
    elif mode == "resident":
        use_resident = True
    elif mode == "stream":
        use_resident = False
    else:
        raise ValueError(f"unknown mode: {mode!r}")

    if use_resident:
        # --- Resident-weight path: no H grid axis, weights fetched once. ---
        vmem_limit = min(96 * 2**20, max(32 * 2**20, resident_est + 8 * 2**20))
        out = pl.pallas_call(
            _mlp_resident_kernel,
            out_shape=jax.ShapeDtypeStruct((M, D), out_dtype),
            grid_spec=pltpu.PrefetchScalarGridSpec(
                num_scalar_prefetch=0,
                grid=(grid_m, grid_d),
                in_specs=[
                    pl.BlockSpec((tile_m, D), lambda i, j: (i, 0)),   # x rows
                    pl.BlockSpec((D, H), lambda i, j: (0, 0)),        # w1 (resident)
                    pl.BlockSpec((1, H), lambda i, j: (0, 0)),        # b1 (resident)
                    pl.BlockSpec((H, tile_d), lambda i, j: (0, j)),   # w2 cols
                    pl.BlockSpec((1, tile_d), lambda i, j: (0, j)),   # b2 cols
                ],
                out_specs=pl.BlockSpec((tile_m, tile_d), lambda i, j: (i, j)),
            ),
            compiler_params=pltpu.CompilerParams(
                # Both axes independent: M rows and (optional) output-column
                # slices can shard across v7x's two TensorCores.
                dimension_semantics=("parallel", "parallel"),
                vmem_limit_bytes=vmem_limit,
            ),
        )(x2, w1, b1, w2, b2)
    else:
        # --- Streaming fallback: H tiled, fc2 partials accumulated in VMEM. ---
        tile_h = _pick_tile_h(H, tile_h)
        grid_h = H // tile_h
        stream_est = _stream_vmem_bytes(tile_m, D, tile_h, x_bytes, o_bytes)
        vmem_limit = min(96 * 2**20, max(32 * 2**20, stream_est + 8 * 2**20))
        out = pl.pallas_call(
            _mlp_stream_kernel,
            out_shape=jax.ShapeDtypeStruct((M, D), out_dtype),
            grid_spec=pltpu.PrefetchScalarGridSpec(
                num_scalar_prefetch=0,
                grid=(grid_m, grid_h),
                in_specs=[
                    pl.BlockSpec((tile_m, D), lambda i, h: (i, 0)),   # x rows
                    pl.BlockSpec((D, tile_h), lambda i, h: (0, h)),   # w1 chunk
                    pl.BlockSpec((1, tile_h), lambda i, h: (0, h)),   # b1 chunk
                    pl.BlockSpec((tile_h, D), lambda i, h: (h, 0)),   # w2 chunk
                    pl.BlockSpec((1, D), lambda i, h: (0, 0)),        # b2
                ],
                out_specs=pl.BlockSpec((tile_m, D), lambda i, h: (i, 0)),
                scratch_shapes=[pltpu.VMEM((tile_m, D), jnp.float32)],
            ),
            compiler_params=pltpu.CompilerParams(
                dimension_semantics=("parallel", "arbitrary"),
                vmem_limit_bytes=vmem_limit,
            ),
        )(x2, w1, b1, w2, b2)

    return out.reshape(B, N, D)


def mlp_reference(x, w1, b1, w2, b2):
    h = x @ w1 + b1
    h = jax.nn.gelu(h, approximate=False)
    return h @ w2 + b2


# ---------------------------------------------------------------------------
# Demo / self-check
# ---------------------------------------------------------------------------

if __name__ == "__main__":
    key = jax.random.PRNGKey(0)

    def make_case(k, B, N, D, H):
        kx, k1, k2, k3, k4 = jax.random.split(k, 5)
        x = jax.random.normal(kx, (B, N, D), dtype=jnp.float32)
        # Synthetic nn.Linear(D,H)/nn.Linear(H,D) params, stored (in, out).
        w1 = jax.random.normal(k1, (D, H), dtype=jnp.float32) * 0.02
        b1 = jax.random.normal(k2, (H,), dtype=jnp.float32) * 0.02
        w2 = jax.random.normal(k3, (H, D), dtype=jnp.float32) * 0.02
        b2 = jax.random.normal(k4, (D,), dtype=jnp.float32) * 0.02
        return x, w1, b1, w2, b2

    def run_and_check(name, case, **kw):
        x, w1, b1, w2, b2 = case
        params = prepare_mlp_params(w1, b1, w2, b2)   # one-time cast, outside per-call path
        y = mlp_pallas(x, *params, **kw)
        y = jax.block_until_ready(y)
        assert y.shape == x.shape, name
        y_ref = mlp_reference(x, w1, b1, w2, b2)
        # bf16 MXU operands -> relaxed tolerance vs the f32 reference.
        err = float(jnp.max(jnp.abs(y - y_ref)))
        assert err < 2e-2, f"{name}: max abs err {err}"

    k_a, k_c = jax.random.split(key)

    # (1) Resident-weight path (default): weights DMA'd once, 2 M tiles,
    #     ragged token count 197 handled without any wrapper-side padding.
    case_a = make_case(k_a, 2, 197, 128, 512)
    run_and_check("resident", case_a, tile_m=256)

    # (2) Streaming fallback (H tiled + f32 accumulator), ragged last M tile.
    run_and_check("stream", case_a, tile_m=128, tile_h=256, mode="stream")

    # (3) Resident path with the output-column split (tile_d) that keeps both
    #     v7x TensorCores busy for small-M inference.
    case_c = make_case(k_c, 2, 197, 256, 512)
    run_and_check("resident_tile_d", case_c, tile_d=128)

    print("KERNEL_OK")
</pallas_src>

<mosaic_0001>
module attributes {stable_mosaic.version = 11 : i64} {
  func.func @_mlp_resident_kernel(%arg0: i32, %arg1: i32, %arg2: memref<256x128xf32, #tpu.memory_space<vmem>>, %arg3: memref<128x512xbf16, #tpu.memory_space<vmem>>, %arg4: memref<1x512xf32, #tpu.memory_space<vmem>>, %arg5: memref<512x128xbf16, #tpu.memory_space<vmem>>, %arg6: memref<1x128xf32, #tpu.memory_space<vmem>>, %arg7: memref<256x128xf32, #tpu.memory_space<vmem>>) attributes {dimension_semantics = [#tpu.dimension_semantics<parallel>, #tpu.dimension_semantics<parallel>], iteration_bounds = array<i64: 2, 1>, scalar_prefetch = 0 : i64, scratch_operands = 0 : i64, tpu.core_type = #tpu.core_type<tc>, window_params = [{transform_indices = @transform_0, window_bounds = array<i64: 256, 128>}, {pipeline_mode = #tpu.pipeline_mode<synchronous>, transform_indices = @transform_1, window_bounds = array<i64: 128, 512>}, {pipeline_mode = #tpu.pipeline_mode<synchronous>, transform_indices = @transform_2, window_bounds = array<i64: 1, 512>}, {transform_indices = @transform_3, window_bounds = array<i64: 512, 128>}, {transform_indices = @transform_4, window_bounds = array<i64: 1, 128>}, {transform_indices = @transform_5, window_bounds = array<i64: 256, 128>}]} {
    %c0 = arith.constant 0 : index
    %c0_0 = arith.constant 0 : index
    %0 = vector.load %arg2[%c0, %c0_0] : memref<256x128xf32, #tpu.memory_space<vmem>>, vector<256x128xf32>
    %1 = arith.truncf %0 : vector<256x128xf32> to vector<256x128xbf16>
    %c0_1 = arith.constant 0 : index
    %c0_2 = arith.constant 0 : index
    %2 = vector.load %arg3[%c0_1, %c0_2] : memref<128x512xbf16, #tpu.memory_space<vmem>>, vector<128x512xbf16>
    %cst = arith.constant dense<0.000000e+00> : vector<256x512xf32>
    %3 = tpu.matmul %1, %2, %cst {dimension_numbers = #tpu.dot_dimension_numbers<[1], [0], [0], [1], [0, 0, 1, 1], [], []>} : vector<256x128xbf16>, vector<128x512xbf16>, vector<256x512xf32> -> vector<256x512xf32>
    %c0_3 = arith.constant 0 : index
    %c0_4 = arith.constant 0 : index
    %4 = vector.load %arg4[%c0_3, %c0_4] : memref<1x512xf32, #tpu.memory_space<vmem>>, vector<1x512xf32>
    %5 = vector.broadcast %4 : vector<1x512xf32> to vector<256x512xf32>
    %6 = arith.addf %3, %5 : vector<256x512xf32>
    %cst_5 = arith.constant 5.000000e-01 : f32
    %7 = vector.broadcast %cst_5 : f32 to vector<256x512xf32>
    %8 = arith.mulf %7, %6 : vector<256x512xf32>
    %cst_6 = arith.constant 0.707106769 : f32
    %9 = vector.broadcast %cst_6 : f32 to vector<256x512xf32>
    %10 = arith.mulf %6, %9 : vector<256x512xf32>
    %11 = math.erf %10 : vector<256x512xf32>
    %cst_7 = arith.constant 1.000000e+00 : f32
    %12 = vector.broadcast %cst_7 : f32 to vector<256x512xf32>
    %13 = arith.addf %12, %11 : vector<256x512xf32>
    %14 = arith.mulf %8, %13 : vector<256x512xf32>
    %15 = arith.truncf %14 : vector<256x512xf32> to vector<256x512xbf16>
    %c0_8 = arith.constant 0 : index
    %c0_9 = arith.constant 0 : index
    %16 = vector.load %arg5[%c0_8, %c0_9] : memref<512x128xbf16, #tpu.memory_space<vmem>>, vector<512x128xbf16>
    %cst_10 = arith.constant dense<0.000000e+00> : vector<256x128xf32>
    %17 = tpu.matmul %15, %16, %cst_10 {dimension_numbers = #tpu.dot_dimension_numbers<[1], [0], [0], [1], [0, 0, 1, 1], [], []>} : vector<256x512xbf16>, vector<512x128xbf16>, vector<256x128xf32> -> vector<256x128xf32>
    %c0_11 = arith.constant 0 : index
    %c0_12 = arith.constant 0 : index
    %18 = vector.load %arg6[%c0_11, %c0_12] : memref<1x128xf32, #tpu.memory_space<vmem>>, vector<1x128xf32>
    %19 = vector.broadcast %18 : vector<1x128xf32> to vector<256x128xf32>
    %20 = arith.addf %17, %19 : vector<256x128xf32>
    %c0_13 = arith.constant 0 : index
    %c0_14 = arith.constant 0 : index
    %21 = vector.load %arg7[%c0_13, %c0_14] : memref<256x128xf32, #tpu.memory_space<vmem>>, vector<256x128xf32>
    tpu.vector_store %arg7[%c0_13, %c0_14], %20 {strides = array<i32>} : memref<256x128xf32, #tpu.memory_space<vmem>>, vector<256x128xf32>,
    return
  }
  func.func @transform_0(%arg0: i32, %arg1: i32) -> (i32, i32) {
    %c0_i32 = arith.constant 0 : i32
    %c0_i32_0 = arith.constant 0 : i32
    return %arg0, %c0_i32 : i32, i32
  }
  func.func @transform_1(%arg0: i32, %arg1: i32) -> (i32, i32) {
    %c0_i32 = arith.constant 0 : i32
    %c0_i32_0 = arith.constant 0 : i32
    %c0_i32_1 = arith.constant 0 : i32
    return %c0_i32, %c0_i32_0 : i32, i32
  }
  func.func @transform_2(%arg0: i32, %arg1: i32) -> (i32, i32) {
    %c0_i32 = arith.constant 0 : i32
    %c0_i32_0 = arith.constant 0 : i32
    %c0_i32_1 = arith.constant 0 : i32
    return %c0_i32, %c0_i32_0 : i32, i32
  }
  func.func @transform_3(%arg0: i32, %arg1: i32) -> (i32, i32) {
    %c0_i32 = arith.constant 0 : i32
    %c0_i32_0 = arith.constant 0 : i32
    return %c0_i32, %arg1 : i32, i32
  }
  func.func @transform_4(%arg0: i32, %arg1: i32) -> (i32, i32) {
    %c0_i32 = arith.constant 0 : i32
    %c0_i32_0 = arith.constant 0 : i32
    return %c0_i32, %arg1 : i32, i32
  }
  func.func @transform_5(%arg0: i32, %arg1: i32) -> (i32, i32) {
    %c0_i32 = arith.constant 0 : i32
    return %arg0, %arg1 : i32, i32
  }
}

</mosaic_0001>

<bundles_post_ra>
// kernel: mlp_pallas.1
= control target key start
LH: loop header
LB: loop body
LE: loop exit
PB: predicated region body
PF: predicated region fallthrough
CT: control target
= control target key end

     0   :  { %s3533_s18 = smov 0   ;;  %s3535_s19 = smov 0   ;;  %s5179_s0 = inlined_call_operand.vmem [shape: f32[394,128], index: 0, kind: input, shape index: {}]   ;;  %s5180_s1 = inlined_call_operand.vmem [shape: bf16[128,512], index: 1, kind: input, shape index: {}]   ;;  %s5181_s2 = inlined_call_operand.vmem [shape: f32[1,512], index: 2, kind: input, shape index: {}]   ;;  %s5182_s3 = inlined_call_operand.vmem [shape: bf16[512,128], index: 3, kind: input, shape index: {}]   ;;  %s5183_s4 = inlined_call_operand.vmem [shape: f32[1,128], index: 4, kind: input, shape index: {}]   ;;  %s5184_s5 = inlined_call_operand.vmem [shape: f32[394,128], index: 5, kind: output, shape index: {}]  }
   0x1   :  { %s3537_s20 = smov 0   ;;  %s3539_s21 = smov 0  }
   0x2   :  { %s3541_s22 = smov 0  }
   0x3 LB: > { %s2638_s23 = sadd.s32 4294967295, %s3468_s22   ;;  %s27_s24 = sadd.s32 1, %s3464_s21  ;;  %s3468_s22 = sphi %s3541_s22, %s15_s22   ;;  %s3464_s21 = sphi %s3539_s21, %s5282_s21   ;;  %s3460_s20 = sphi %s3537_s20, %s5281_s20   ;;  %s3456_s19 = sphi %s3535_s19, %s5280_s19   ;;  %s3452_s18 = sphi %s3533_s18, %s5279_s18  }
   0x4   : > { %p29_p0 = scmp.ge.s32.totalorder %s27_s24, 2  ;;  %s156_s25 = sadd.s32 1, %s3456_s19 }
   0x5   : > { %p166_p1 = scmp.ne.s32.totalorder %s3456_s19, %s3452_s18  ;;  %p167_p2 = scmp.eq.s32.totalorder %s2638_s23, 1 }
   0x6   : > { %s5284_s24 = smov (%p29_p0, %s27_s24), 0  ;;  %p2644_p4 = scmp.ge.s32.totalorder %s3468_s22, 1 }
   0x7   : > { %p3565_p3 = por %p167_p2, %p166_p1  ;;  %s151_s27 = ssub.s32 %s3464_s21, %s5284_s24 }
   0x8   : > { %p227_p5 = scmp.lt.s32.totalorder %s3468_s22, 3  ;;  %p154_p6 = scmp.eq.s32.totalorder %s151_s27, 0 }
   0xa   : > { %p228_p7 = pnand %p2644_p4, %p227_p5 }
   0xb   : > { %s3574_s28 = scalar_select %p154_p6, %s3456_s19, %s156_s25  }
   0xc   : > { %231 = sbr.rel (%p228_p7) target bundleno = 763 (0x2fb), region = 40 }
  0x13   : > { %v3062_v0 = vld [vmem:[%s5180_s1 + $0x4] ss:$16 sps:$4 sm:$0xff]   ;;  %v3064_v1 = vld [vmem:[%s5180_s1 + $0xc] ss:$16 sps:$4 sm:$0xff]   ;;  %v3502_v2 = vmov 0   ;;  %s3624_s17 = sshll.u32 %s3460_s20, 5 }
  0x14   : > { %586 = vmatprep.mubr.bf16.mxu0 %v3502_v2  ;;  %779 = vmatprep.mubr.bf16.mxu1 %v3502_v2  ;;  %v3066_v3 = vld [vmem:[%s5180_s1] ss:$16 sps:$4 sm:$0xff]   ;;  %v3067_v4 = vld [vmem:[%s5180_s1 + $0x8] ss:$16 sps:$4 sm:$0xff]   ;;  %v3068_v5 = vld [vmem:[%s5180_s1 + $0x24] ss:$16 sps:$4 sm:$0xff]  }
  0x15   : > { %554 = vmatprep.subr.bf16.mxu0 %v3062_v0  ;;  %747 = vmatprep.subr.bf16.mxu1 %v3064_v1  ;;  %v3070_v6 = vld [vmem:[%s5180_s1 + $0x2c] ss:$16 sps:$4 sm:$0xff]   ;;  %v3072_v7 = vld [vmem:[%s5180_s1 + $0x20] ss:$16 sps:$4 sm:$0xff]   ;;  %v3073_v8 = vld [vmem:[%s5180_s1 + $0x28] ss:$16 sps:$4 sm:$0xff]  }
  0x16   : > { %555 = vmatpush1.bf16.msra.mxu0 %v3066_v3  ;;  %748 = vmatpush1.bf16.msra.mxu1 %v3067_v4  ;;  %v3074_v9 = vld [vmem:[%s5180_s1 + $0x44] ss:$16 sps:$4 sm:$0xff]   ;;  %v3076_v10 = vld [vmem:[%s5180_s1 + $0x4c] ss:$16 sps:$4 sm:$0xff]   ;;  %v3078_v11 = vld [vmem:[%s5180_s1 + $0x40] ss:$16 sps:$4 sm:$0xff]  }
  0x17   : > { %556 = vmatprep.subr.bf16.mxu0 %v3068_v5  ;;  %749 = vmatprep.subr.bf16.mxu1 %v3070_v6  ;;  %v3079_v12 = vld [vmem:[%s5180_s1 + $0x48] ss:$16 sps:$4 sm:$0xff]   ;;  %v3080_v13 = vld [vmem:[%s5180_s1 + $0x64] ss:$16 sps:$4 sm:$0xff]   ;;  %v3082_v14 = vld [vmem:[%s5180_s1 + $0x6c] ss:$16 sps:$4 sm:$0xff]  }
  0x18   : > { %v3084_v15 = vld [vmem:[%s5180_s1 + $0x60] ss:$16 sps:$4 sm:$0xff]   ;;  %v3085_v16 = vld [vmem:[%s5180_s1 + $0x68] ss:$16 sps:$4 sm:$0xff]   ;;  %v3086_v17 = vld [vmem:[%s5180_s1 + $0x84] ss:$16 sps:$4 sm:$0xff]  }
  0x19   : > { %v3088_v18 = vld [vmem:[%s5180_s1 + $0x8c] ss:$16 sps:$4 sm:$0xff]   ;;  %p270_p8 = scmp.lt.s32.totalorder %s3624_s17, 49  ;;  %v3090_v19 = vld [vmem:[%s5180_s1 + $0x80] ss:$16 sps:$4 sm:$0xff]   ;;  %s2730_s25 = sshll.u32 (%p3565_p3), %s3460_s20, 8 }
  0x1a   : > { %557 = vmatpush1.bf16.msra.mxu0 %v3072_v7  ;;  %750 = vmatpush1.bf16.msra.mxu1 %v3073_v8  ;;  %v3091_v20 = vld [vmem:[%s5180_s1 + $0x88] ss:$16 sps:$4 sm:$0xff]   ;;  %v3092_v21 = vld [vmem:[%s5180_s1 + $0xa4] ss:$16 sps:$4 sm:$0xff]   ;;  %v3094_v22 = vld [vmem:[%s5180_s1 + $0xac] ss:$16 sps:$4 sm:$0xff]   ;;  %s5042_s6 = scalar_lea.vmem (%p3565_p3), %s5184_s5, %s2730_s25  }
  0x1b   : > { %558 = vmatprep.subr.bf16.mxu0 %v3074_v9  ;;  %751 = vmatprep.subr.bf16.mxu1 %v3076_v10  ;;  %s271_s15 = scalar_select %p270_p8, %s3624_s17, 49  ;;  %v3096_v23 = vld [vmem:[%s5180_s1 + $0xa0] ss:$16 sps:$4 sm:$0xff]   ;;  %v3097_v24 = vld [vmem:[%s5180_s1 + $0xa8] ss:$16 sps:$4 sm:$0xff]  }
  0x1c   : > { %v3098_v25 = vld [vmem:[%s5180_s1 + $0xc4] ss:$16 sps:$4 sm:$0xff]   ;;  %v3100_v26 = vld [vmem:[%s5180_s1 + $0xcc] ss:$16 sps:$4 sm:$0xff]   ;;  %v3102_v27 = vld [vmem:[%s5180_s1 + $0xc0] ss:$16 sps:$4 sm:$0xff]  }
  0x1d   : > { %s2647_s8 = sshll.u32 %s271_s15, 3  ;;  %v3103_v28 = vld [vmem:[%s5180_s1 + $0xc8] ss:$16 sps:$4 sm:$0xff]   ;;  %v3104_v29 = vld [vmem:[%s5180_s1 + $0xe4] ss:$16 sps:$4 sm:$0xff]   ;;  %s2269_s15 = ssub.s32 (%p3565_p3), 50, %s3624_s17 }
  0x1e   : > { %559 = vmatpush1.bf16.msra.mxu0 %v3078_v11  ;;  %752 = vmatpush1.bf16.msra.mxu1 %v3079_v12  ;;  %v3106_v30 = vld [vmem:[%s5180_s1 + $0xec] ss:$16 sps:$4 sm:$0xff]   ;;  %s3676_s27 = scalar_lea.vmem %s5179_s0, %s2647_s8  ;;  %v3108_v31 = vld [vmem:[%s5180_s1 + $0xe0] ss:$16 sps:$4 sm:$0xff]   ;;  %v3109_v32 = vld [vmem:[%s5180_s1 + $0xe8] ss:$16 sps:$4 sm:$0xff]  }
  0x1f   : > { %560 = vmatprep.subr.bf16.mxu0 %v3080_v13  ;;  %753 = vmatprep.subr.bf16.mxu1 %v3082_v14  ;;  %v292_v33 = vld [vmem:[%s3676_s27] sm:$0xff]  ;;  %v293_v34 = vld [vmem:[%s3676_s27 + $0x8] sm:$0xff]  ;;  %v294_v40 = vld [vmem:[%s3676_s27 + $0x10] sm:$0xff]  ;;  %p2270_p9 = scmp.lt.s32.totalorder (%p3565_p3), %s2269_s15, 32 }
  0x20   : > { %v324_v35 = vpack.c.bf16 %v293_v34, %v292_v33  ;;  %v3110_v36 = vld [vmem:[%s5182_s3 + $0x40] sm:$0xff]   ;;  %v295_v41 = vld [vmem:[%s3676_s27 + $0x18] sm:$0xff]  ;;  %v3114_v42 = vld [vmem:[%s5182_s3 + $0x48] sm:$0xff]  }
  0x21   : > { %v3111_v37 = vld [vmem:[%s5182_s3] sm:$0xff]   ;;  %v3115_v43 = vld [vmem:[%s5182_s3 + $0x8] sm:$0xff]   ;;  %v325_v45 = vpack.c.bf16 %v295_v41, %v294_v40  ;;  %v3118_v47 = vld [vmem:[%s5182_s3 + $0x50] sm:$0xff]  }
  0x22   : > { %561 = vmatpush1.bf16.msra.mxu0 %v3084_v15  ;;  %754 = vmatpush1.bf16.msra.mxu1 %v3085_v16  ;;  %v3112_v38 = vld [vmem:[%s5182_s3 + $0xc0] sm:$0xff]   ;;  %v3116_v44 = vld [vmem:[%s5182_s3 + $0xc8] sm:$0xff]   ;;  %v3119_v48 = vld [vmem:[%s5182_s3 + $0x10] sm:$0xff]  }
  0x23   : > { %562 = vmatprep.subr.bf16.mxu0 %v3086_v17  ;;  %755 = vmatprep.subr.bf16.mxu1 %v3088_v18  ;;  %v3113_v39 = vld [vmem:[%s5182_s3 + $0x80] sm:$0xff]   ;;  %v3117_v46 = vld [vmem:[%s5182_s3 + $0x88] sm:$0xff]   ;;  %v3120_v51 = vld [vmem:[%s5182_s3 + $0xd0] sm:$0xff]  }
  0x24   : > { %v296_v49 = vld [vmem:[%s3676_s27 + $0x20] sm:$0xff]  ;;  %v297_v50 = vld [vmem:[%s3676_s27 + $0x28] sm:$0xff]  ;;  %v3121_v52 = vld [vmem:[%s5182_s3 + $0x90] sm:$0xff]  }
  0x25   : > { %v3122_v53 = vld [vmem:[%s5182_s3 + $0x58] sm:$0xff]   ;;  %v326_v56 = vpack.c.bf16 %v297_v50, %v296_v49  ;;  %v3126_v58 = vld [vmem:[%s5182_s3 + $0x60] sm:$0xff]   ;;  %v298_v60 = vld [vmem:[%s3676_s27 + $0x30] sm:$0xff]  ;;  %v374_v50 = vlaneseq }
  0x26   : > { %563 = vmatpush1.bf16.msra.mxu0 %v3090_v19  ;;  %756 = vmatpush1.bf16.msra.mxu1 %v3091_v20  ;;  %v3123_v54 = vld [vmem:[%s5182_s3 + $0x18] sm:$0xff]   ;;  %v3127_v59 = vld [vmem:[%s5182_s3 + $0x20] sm:$0xff]   ;;  %v3130_v0 = vld [vmem:[%s5182_s3 + $0x68] sm:$0xff]  }
  0x27   : > { %564 = vmatprep.subr.bf16.mxu0 %v3092_v21  ;;  %757 = vmatprep.subr.bf16.mxu1 %v3094_v22  ;;  %v3124_v55 = vld [vmem:[%s5182_s3 + $0xd8] sm:$0xff]   ;;  %v3128_v62 = vld [vmem:[%s5182_s3 + $0xe0] sm:$0xff]   ;;  %v3131_v1 = vld [vmem:[%s5182_s3 + $0x28] sm:$0xff]  }
  0x28   : > { %v3125_v57 = vld [vmem:[%s5182_s3 + $0x98] sm:$0xff]   ;;  %v3129_v63 = vld [vmem:[%s5182_s3 + $0xa0] sm:$0xff]   ;;  %v3132_v3 = vld [vmem:[%s5182_s3 + $0xe8] sm:$0xff]  }
  0x29   : > { %v299_v61 = vld [vmem:[%s3676_s27 + $0x38] sm:$0xff]  ;;  %v3133_v5 = vld [vmem:[%s5182_s3 + $0xa8] sm:$0xff]   ;;  %v3134_v6 = vld [vmem:[%s5182_s3 + $0x70] sm:$0xff]  }
  0x2a   : > { %565 = vmatpush1.bf16.msra.mxu0 %v3096_v23  ;;  %758 = vmatpush1.bf16.msra.mxu1 %v3097_v24  ;;  %v327_v4 = vpack.c.bf16 %v299_v61, %v298_v60  ;;  %v3135_v7 = vld [vmem:[%s5182_s3 + $0x30] sm:$0xff]   ;;  %v300_v8 = vld [vmem:[%s3676_s27 + $0x40] sm:$0xff]  ;;  %v301_v11 = vld [vmem:[%s3676_s27 + $0x48] sm:$0xff] }
  0x2b   : > { %566 = vmatprep.subr.bf16.mxu0 %v3098_v25  ;;  %759 = vmatprep.subr.bf16.mxu1 %v3100_v26  ;;  %v3136_v9 = vld [vmem:[%s5182_s3 + $0xf0] sm:$0xff]   ;;  %v328_v12 = vpack.c.bf16 %v301_v11, %v300_v8  ;;  %v303_v14 = vld [vmem:[%s3676_s27 + $0x58] sm:$0xff]  ;;  %v304_v16 = vld [vmem:[%s3676_s27 + $0x60] sm:$0xff] }
  0x2c   : > { %v3137_v10 = vld [vmem:[%s5182_s3 + $0xb0] sm:$0xff]   ;;  %v305_v17 = vld [vmem:[%s3676_s27 + $0x68] sm:$0xff]  ;;  %v307_v20 = vld [vmem:[%s3676_s27 + $0x78] sm:$0xff] }
  0x2d   : > { %v302_v13 = vld [vmem:[%s3676_s27 + $0x50] sm:$0xff]  ;;  %v330_v18 = vpack.c.bf16 %v305_v17, %v304_v16  ;;  %v308_v22 = vld [vmem:[%s3676_s27 + $0x80] sm:$0xff]  ;;  %v309_v23 = vld [vmem:[%s3676_s27 + $0x88] sm:$0xff] }
  0x2e   : > { %567 = vmatpush1.bf16.msra.mxu0 %v3102_v27  ;;  %760 = vmatpush1.bf16.msra.mxu1 %v3103_v28  ;;  %v329_v15 = vpack.c.bf16 %v303_v14, %v302_v13  ;;  %v306_v19 = vld [vmem:[%s3676_s27 + $0x70] sm:$0xff]  ;;  %v332_v24 = vpack.c.bf16 %v309_v23, %v308_v22  ;;  %v311_v26 = vld [vmem:[%s3676_s27 + $0x98] sm:$0xff]  ;;  %v312_v28 = vld [vmem:[%s3676_s27 + $0xa0] sm:$0xff] }
  0x2f   : > { %568 = vmatprep.subr.bf16.mxu0 %v3104_v29  ;;  %761 = vmatprep.subr.bf16.mxu1 %v3106_v30  ;;  %v331_v21 = vpack.c.bf16 %v307_v20, %v306_v19  ;;  %v310_v25 = vld [vmem:[%s3676_s27 + $0x90] sm:$0xff]  ;;  %v313_v29 = vld [vmem:[%s3676_s27 + $0xa8] sm:$0xff]  ;;  %v316_v34 = vld [vmem:[%s3676_s27 + $0xc0] sm:$0xff] }
  0x30   : > { %v333_v27 = vpack.c.bf16 %v311_v26, %v310_v25  ;;  %v334_v30 = vpack.c.bf16 %v313_v29, %v312_v28  ;;  %v320_v40 = vld [vmem:[%s3676_s27 + $0xe0] sm:$0xff]  ;;  %v321_v41 = vld [vmem:[%s3676_s27 + $0xe8] sm:$0xff] }
  0x32   : > { %569 = vmatpush1.bf16.msra.mxu0 %v3108_v31  ;;  %762 = vmatpush1.bf16.msra.mxu1 %v3109_v32  ;;  %v314_v31 = vld [vmem:[%s3676_s27 + $0xb0] sm:$0xff]  ;;  %v315_v32 = vld [vmem:[%s3676_s27 + $0xb8] sm:$0xff] }
  0x33   : > { %2733 = vmatprep.subr.bf16.mxu0 %v3110_v36  ;;  %2845 = vmatprep.subr.bf16.mxu1 %v3112_v38  ;;  %v335_v33 = vpack.c.bf16 %v315_v32, %v314_v31  ;;  %v319_v38 = vld [vmem:[%s3676_s27 + $0xd8] sm:$0xff] }
  0x35   : > { %587 = vmatmul.mubr.bf16.vlgmr.msra.gmra.mrb[0].mxu0 %v324_v35  ;;  %780 = vmatmul.mubr.bf16.vlgmr.msra.gmra.mrb[0].mxu1 %v324_v35  ;;  %v317_v35 = vld [vmem:[%s3676_s27 + $0xc8] sm:$0xff] }
  0x36   : > { %596 = vmatprep.mubr.bf16.mxu0 %v3502_v2  ;;  %789 = vmatprep.mubr.bf16.mxu1 %v3502_v2  ;;  %v336_v36 = vpack.c.bf16 %v317_v35, %v316_v34 }
  0x37   : > { %2734 = vmatpush3.bf16.msra.mxu0 %v3111_v37  ;;  %2846 = vmatpush3.bf16.msra.mxu1 %v3113_v39  ;;  %v318_v37 = vld [vmem:[%s3676_s27 + $0xd0] sm:$0xff] }
  0x38   : > { %2735 = vmatprep.subr.bf16.mxu0 %v3114_v42  ;;  %2847 = vmatprep.subr.bf16.mxu1 %v3116_v44  ;;  %v337_v39 = vpack.c.bf16 %v319_v38, %v318_v37  ;;  %v3138_v42 = vld [vmem:[%s5182_s3 + $0x78] sm:$0xff]  }
  0x39   : > { %v3139_v44 = vld [vmem:[%s5182_s3 + $0x38] sm:$0xff]  }
  0x3b   : > { %2736 = vmatpush3.bf16.msra.mxu0 %v3115_v43  ;;  %2848 = vmatpush3.bf16.msra.mxu1 %v3117_v46  ;;  %v338_v43 = vpack.c.bf16 %v321_v41, %v320_v40  ;;  %v3141_v46 = vld [vmem:[%s5182_s3 + $0xb8] sm:$0xff]  }
  0x3c   : > { %2737 = vmatprep.subr.bf16.mxu0 %v3118_v47  ;;  %2849 = vmatprep.subr.bf16.mxu1 %v3120_v51  ;;  %v322_v47 = vld [vmem:[%s3676_s27 + $0xf0] sm:$0xff]  ;;  %v375_v51 = vshrl.u32 %v374_v50, 7 }
  0x3d   : > { %597 = vmatmul.mubr.bf16.gmra.mrb[4].mxu0 %v325_v45  ;;  %790 = vmatmul.mubr.bf16.gmra.mrb[4].mxu1 %v325_v45  ;;  %v3140_v45 = vld [vmem:[%s5182_s3 + $0xf8] sm:$0xff]  }
  0x3e   : > { %606 = vmatprep.mubr.bf16.mxu0 %v3502_v2  ;;  %799 = vmatprep.mubr.bf16.mxu1 %v3502_v2 }
  0x3f   : > { %2738 = vmatpush3.bf16.msra.mxu0 %v3119_v48  ;;  %2850 = vmatpush3.bf16.msra.mxu1 %v3121_v52  ;;  %v323_v48 = vld [vmem:[%s3676_s27 + $0xf8] sm:$0xff]  ;;  %v376_v52 = vsub.s32 0, %v375_v51  ;;  %s262_s27 = sand.u32 1, %s3452_s18  }
  0x40   : > { %2739 = vmatprep.subr.bf16.mxu0 %v3122_v53  ;;  %2851 = vmatprep.subr.bf16.mxu1 %v3124_v55  ;;  %v339_v49 = vpack.c.bf16 %v323_v48, %v322_v47  ;;  %v384_v53 = vsub.s32 2, %v375_v51  ;;  %v380_v55 = vsub.s32 1, %v375_v51  ;;  %s2645_s23 = sshll.u32 %s262_s27, 8 }
  0x41   : > { %s4971_s18 = scalar_lea.vmem [#allocation2], %s2645_s23  }
  0x43   : > { %2740 = vmatpush3.bf16.msra.mxu0 %v3123_v54  ;;  %2852 = vmatpush3.bf16.msra.mxu1 %v3125_v57  ;;  %v372_v54 = vld [vmem:[%s5181_s2] sm:$0xf] }
  0x44   : > { %2741 = vmatprep.subr.bf16.mxu0 %v3126_v58  ;;  %2853 = vmatprep.subr.bf16.mxu1 %v3128_v62  ;;  %v3845_v57 = vrot.slane %v372_v54, %v376_v52  ;;  %v3847_v58 = vrot.slane %v372_v54, %v384_v53 }
  0x45   : > { %607 = vmatmul.mubr.bf16.gmra.mrb[8].mxu0 %v326_v56  ;;  %800 = vmatmul.mubr.bf16.gmra.mrb[8].mxu1 %v326_v56  ;;  %v388_v56 = vsub.s32 3, %v375_v51 }
  0x46   : > { %616 = vmatprep.mubr.bf16.mxu0 %v3502_v2  ;;  %809 = vmatprep.mubr.bf16.mxu1 %v3502_v2 }
  0x47   : > { %2742 = vmatpush3.bf16.msra.mxu0 %v3127_v59  ;;  %2854 = vmatpush3.bf16.msra.mxu1 %v3129_v63  ;;  %v3851_v59 = vrot.slane %v372_v54, %v388_v56 }
  0x48   : > { %2743 = vmatprep.subr.bf16.mxu0 %v3130_v0  ;;  %2855 = vmatprep.subr.bf16.mxu1 %v3132_v3 }
  0x4b   : > { %2744 = vmatpush3.bf16.msra.mxu0 %v3131_v1  ;;  %2856 = vmatpush3.bf16.msra.mxu1 %v3133_v5 }
  0x4c   : > { %2745 = vmatprep.subr.bf16.mxu0 %v3134_v6  ;;  %2857 = vmatprep.subr.bf16.mxu1 %v3136_v9 }
  0x4d   : > { %617 = vmatmul.mubr.bf16.gmra.mrb[12].mxu0 %v327_v4  ;;  %810 = vmatmul.mubr.bf16.gmra.mrb[12].mxu1 %v327_v4 }
  0x4e   : > { %626 = vmatprep.mubr.bf16.mxu0 %v3502_v2  ;;  %819 = vmatprep.mubr.bf16.mxu1 %v3502_v2 }
  0x4f   : > { %2746 = vmatpush3.bf16.msra.mxu0 %v3135_v7  ;;  %2858 = vmatpush3.bf16.msra.mxu1 %v3137_v10 }
  0x50   : > { %2747 = vmatprep.subr.bf16.mxu0 %v3138_v42  ;;  %2859 = vmatprep.subr.bf16.mxu1 %v3140_v45 }
  0x53   : > { %2748 = vmatpush3.bf16.msra.mxu0 %v3139_v44  ;;  %2860 = vmatpush3.bf16.msra.mxu1 %v3141_v46 }
  0x55   : > { %627 = vmatmul.mubr.bf16.gmra.mrb[16].mxu0 %v328_v12  ;;  %820 = vmatmul.mubr.bf16.gmra.mrb[16].mxu1 %v328_v12 }
  0x56   : > { %636 = vmatprep.mubr.bf16.mxu0 %v3502_v2  ;;  %829 = vmatprep.mubr.bf16.mxu1 %v3502_v2 }
  0x5d   : > { %637 = vmatmul.mubr.bf16.gmra.mrb[20].mxu0 %v329_v15  ;;  %830 = vmatmul.mubr.bf16.gmra.mrb[20].mxu1 %v329_v15 }
  0x5e   : > { %646 = vmatprep.mubr.bf16.mxu0 %v3502_v2  ;;  %839 = vmatprep.mubr.bf16.mxu1 %v3502_v2 }
  0x65   : > { %647 = vmatmul.mubr.bf16.gmra.mrb[24].mxu0 %v330_v18  ;;  %840 = vmatmul.mubr.bf16.gmra.mrb[24].mxu1 %v330_v18 }
  0x66   : > { %656 = vmatprep.mubr.bf16.mxu0 %v3502_v2  ;;  %849 = vmatprep.mubr.bf16.mxu1 %v3502_v2 }
  0x6d   : > { %657 = vmatmul.mubr.bf16.gmra.mrb[28].mxu0 %v331_v21  ;;  %850 = vmatmul.mubr.bf16.gmra.mrb[28].mxu1 %v331_v21 }
  0x6e   : > { %666 = vmatprep.mubr.bf16.mxu0 %v3502_v2  ;;  %859 = vmatprep.mubr.bf16.mxu1 %v3502_v2 }
  0x75   : > { %667 = vmatmul.mubr.bf16.gmra.mrb[32].mxu0 %v332_v24  ;;  %860 = vmatmul.mubr.bf16.gmra.mrb[32].mxu1 %v332_v24 }
  0x76   : > { %676 = vmatprep.mubr.bf16.mxu0 %v3502_v2  ;;  %869 = vmatprep.mubr.bf16.mxu1 %v3502_v2 }
  0x7d   : > { %677 = vmatmul.mubr.bf16.gmra.mrb[36].mxu0 %v333_v27  ;;  %870 = vmatmul.mubr.bf16.gmra.mrb[36].mxu1 %v333_v27 }
  0x7e   : > { %686 = vmatprep.mubr.bf16.mxu0 %v3502_v2  ;;  %879 = vmatprep.mubr.bf16.mxu1 %v3502_v2 }
  0x85   : > { %687 = vmatmul.mubr.bf16.gmra.mrb[40].mxu0 %v334_v30  ;;  %880 = vmatmul.mubr.bf16.gmra.mrb[40].mxu1 %v334_v30 }
  0x86   : > { %696 = vmatprep.mubr.bf16.mxu0 %v3502_v2  ;;  %889 = vmatprep.mubr.bf16.mxu1 %v3502_v2 }
  0x8d   : > { %697 = vmatmul.mubr.bf16.gmra.mrb[44].mxu0 %v335_v33  ;;  %890 = vmatmul.mubr.bf16.gmra.mrb[44].mxu1 %v335_v33 }
  0x8e   : > { %706 = vmatprep.mubr.bf16.mxu0 %v3502_v2  ;;  %899 = vmatprep.mubr.bf16.mxu1 %v3502_v2 }
  0x95   : > { %707 = vmatmul.mubr.bf16.gmra.mrb[48].mxu0 %v336_v36  ;;  %900 = vmatmul.mubr.bf16.gmra.mrb[48].mxu1 %v336_v36 }
  0x96   : > { %716 = vmatprep.mubr.bf16.mxu0 %v3502_v2  ;;  %909 = vmatprep.mubr.bf16.mxu1 %v3502_v2 }
  0x9d   : > { %717 = vmatmul.mubr.bf16.gmra.mrb[52].mxu0 %v337_v39  ;;  %910 = vmatmul.mubr.bf16.gmra.mrb[52].mxu1 %v337_v39 }
  0x9e   : > { %726 = vmatprep.mubr.bf16.mxu0 %v3502_v2  ;;  %919 = vmatprep.mubr.bf16.mxu1 %v3502_v2 }
  0xa5   : > { %727 = vmatmul.mubr.bf16.gmra.mrb[56].mxu0 %v338_v43  ;;  %920 = vmatmul.mubr.bf16.gmra.mrb[56].mxu1 %v338_v43 }
  0xa6   : > { %736 = vmatprep.mubr.bf16.mxu0 %v3502_v2  ;;  %929 = vmatprep.mubr.bf16.mxu1 %v3502_v2  ;;  %v3849_v2 = vrot.slane %v372_v54, %v380_v55 }
  0xad   : > { %737 = vmatmul.mubr.bf16.gmra.mrb[60].mxu0 %v339_v49  ;;  %930 = vmatmul.mubr.bf16.gmra.mrb[60].mxu1 %v339_v49 }
 0x108   : > { %v588_v60 = vpop.f32.mrb[0].mxu0  ;;  %v781_v61 = vpop.f32.mrb[0].mxu1 }
 0x109   : > { %v589_v62 = vadd.f32 %v588_v60, %v3845_v57  ;;  %v782_v63 = vadd.f32 %v781_v61, %v3847_v58  ;;  %v590_v0 = vpop.f32.mrb[1].mxu0  ;;  %v783_v1 = vpop.f32.mrb[1].mxu1 }
 0x10a   : > { %v591_v3 = vadd.f32 %v590_v0, %v3849_v2  ;;  %v784_v4 = vadd.f32 %v783_v1, %v3851_v59  ;;  %v592_v5 = vpop.f32.mrb[2].mxu0  ;;  %v785_v6 = vpop.f32.mrb[2].mxu1 }
 0x10b   : > { %v1068_v7 = vmul.f32 0.70710677, %v589_v62  ;;  %v1070_v8 = vmul.f32 0.70710677, %v782_v63  ;;  %v593_v11 = vadd.f32 %v592_v5, %v3845_v57  ;;  %v786_v12 = vadd.f32 %v785_v6, %v3847_v58  ;;  %v594_v13 = vpop.f32.mrb[3].mxu0  ;;  %v787_v14 = vpop.f32.mrb[3].mxu1 }
 0x10c   : > { %v1069_v9 = vmul.f32 0.70710677, %v591_v3  ;;  %v1071_v10 = vmul.f32 0.70710677, %v784_v4  ;;  %v595_v15 = vadd.f32 %v594_v13, %v3849_v2  ;;  %v788_v16 = vadd.f32 %v787_v14, %v3851_v59 }
 0x10d   : > { %3142 = verf.f32 %v1068_v7  ;;  %v1072_v17 = vmul.f32 0.70710677, %v593_v11  ;;  %v1074_v18 = vmul.f32 0.70710677, %v786_v12  ;;  %v940_v35 = vmul.f32 0.5, %v589_v62 }
 0x10e   : > { %3144 = verf.f32 %v1070_v8  ;;  %v1073_v19 = vmul.f32 0.70710677, %v595_v15  ;;  %v1075_v21 = vmul.f32 0.70710677, %v788_v16  ;;  %v942_v42 = vmul.f32 0.5, %v782_v63 }
 0x10f   : > { %3146 = verf.f32 %v1069_v9  ;;  %v941_v43 = vmul.f32 0.5, %v591_v3  ;;  %v3868_v44 = vmul.f32 0.5, %v784_v4  ;;  %v944_v45 = vmul.f32 0.5, %v593_v11 }
 0x110   : > { %3148 = verf.f32 %v1071_v10  ;;  %v598_v20 = vpop.f32.mrb[4].mxu0  ;;  %v791_v23 = vpop.f32.mrb[4].mxu1  ;;  %v946_v48 = vmul.f32 0.5, %v786_v12  ;;  %v3870_v53 = vmul.f32 0.5, %v595_v15  ;;  %v3872_v54 = vmul.f32 0.5, %v788_v16 }
 0x111   : > { %3150 = verf.f32 %v1072_v17  ;;  %v599_v22 = vadd.f32 %v598_v20, %v3845_v57  ;;  %v600_v24 = vpop.f32.mrb[5].mxu0  ;;  %v792_v25 = vadd.f32 %v791_v23, %v3847_v58  ;;  %v793_v27 = vpop.f32.mrb[5].mxu1 }
 0x112   : > { %3152 = verf.f32 %v1074_v18  ;;  %v601_v26 = vadd.f32 %v600_v24, %v3849_v2  ;;  %v602_v28 = vpop.f32.mrb[6].mxu0  ;;  %v794_v30 = vadd.f32 %v793_v27, %v3851_v59  ;;  %v795_v31 = vpop.f32.mrb[6].mxu1 }
 0x113   : > { %3154 = verf.f32 %v1073_v19  ;;  %v1076_v29 = vmul.f32 0.70710677, %v599_v22  ;;  %v604_v32 = vpop.f32.mrb[7].mxu0  ;;  %v1078_v33 = vmul.f32 0.70710677, %v792_v25  ;;  %v797_v34 = vpop.f32.mrb[7].mxu1  ;;  %v603_v38 = vadd.f32 %v602_v28, %v3845_v57 }
 0x114   : > { %3156 = verf.f32 %v1075_v21  ;;  %v1077_v36 = vmul.f32 0.70710677, %v601_v26  ;;  %v1079_v37 = vmul.f32 0.70710677, %v794_v30  ;;  %v796_v39 = vadd.f32 %v795_v31, %v3847_v58 }
 0x115   : > { %3158 = verf.f32 %v1076_v29  ;;  %v605_v40 = vadd.f32 %v604_v32, %v3849_v2  ;;  %v1080_v49 = vmul.f32 0.70710677, %v603_v38  ;;  %v798_v56 = vadd.f32 %v797_v34, %v3851_v59 }
 0x116   : > { %3160 = verf.f32 %v1078_v33  ;;  %v1082_v55 = vmul.f32 0.70710677, %v796_v39  ;;  %v3875_v63 = vmul.f32 0.5, %v599_v22  ;;  %v3877_v5 = vmul.f32 0.5, %v792_v25 }
 0x117   : > { %v3143_v41 = vpop.eup %3142  ;;  %3162 = verf.f32 %v1077_v36  ;;  %v1081_v0 = vmul.f32 0.70710677, %v605_v40  ;;  %v3879_v6 = vmul.f32 0.5, %v601_v26  ;;  %v3881_v7 = vmul.f32 0.5, %v794_v30 }
 0x118   : > { %v3145_v46 = vpop.eup %3144  ;;  %v1324_v47 = vadd.f32 1.0, %v3143_v41  ;;  %v608_v50 = vpop.f32.mrb[8].mxu0  ;;  %3164 = verf.f32 %v1079_v37  ;;  %v3887_v14 = vmul.f32 0.5, %v603_v38  ;;  %v1083_v18 = vmul.f32 0.70710677, %v798_v56 }
 0x119   : > { %v801_v51 = vpop.f32.mrb[8].mxu1  ;;  %v3147_v52 = vpop.eup %3146  ;;  %v1326_v62 = vadd.f32 1.0, %v3145_v46  ;;  %3166 = verf.f32 %v1080_v49  ;;  %v609_v19 = vadd.f32 %v608_v50, %v3845_v57  ;;  %v3902_v31 = vmul.f32 0.5, %v796_v39 }
 0x11a   : > { %v610_v60 = vpop.f32.mrb[9].mxu0  ;;  %v3149_v61 = vpop.eup %3148  ;;  %v3885_v11 = vmul.f32 %v1324_v47, %v940_v35  ;;  %v1325_v12 = vadd.f32 1.0, %v3147_v52  ;;  %3168 = verf.f32 %v1082_v55  ;;  %v802_v23 = vadd.f32 %v801_v51, %v3847_v58 }
 0x11b   : > { %v803_v1 = vpop.f32.mrb[9].mxu1  ;;  %v612_v3 = vpop.f32.mrb[10].mxu0  ;;  %v3892_v21 = vmul.f32 %v1326_v62, %v942_v42  ;;  %3170 = verf.f32 %v1081_v0  ;;  %v1327_v25 = vadd.f32 1.0, %v3149_v61  ;;  %v1084_v27 = vmul.f32 0.70710677, %v609_v19 }
 0x11c   : > { %v3151_v4 = vpop.eup %3150  ;;  %v805_v8 = vpop.f32.mrb[10].mxu1  ;;  %v611_v28 = vadd.f32 %v610_v60, %v3849_v2  ;;  %v3904_v32 = vmul.f32 0.5, %v605_v40  ;;  %v3906_v33 = vmul.f32 0.5, %v798_v56  ;;  %v3910_v36 = vmul.f32 %v1325_v12, %v941_v43 }
 0x11d   : > { %v3883_v9 = vpop.f32.mrb[11].mxu0  ;;  %v3153_v10 = vpop.eup %3152  ;;  %v1328_v13 = vadd.f32 1.0, %v3151_v4  ;;  %3172 = verf.f32 %v1083_v18  ;;  %v1086_v46 = vmul.f32 0.70710677, %v802_v23  ;;  %v3923_v43 = vmul.f32 %v1327_v25, %v3868_v44 }
 0x11e   : > { %v3889_v15 = vpop.f32.mrb[11].mxu1  ;;  %v3155_v16 = vpop.eup %3154  ;;  %v1330_v17 = vadd.f32 1.0, %v3153_v10  ;;  %3174 = verf.f32 %v1084_v27  ;;  %v1085_v50 = vmul.f32 0.70710677, %v611_v28  ;;  %v804_v51 = vadd.f32 %v803_v1, %v3851_v59 }
 0x11f   : > { %v3157_v20 = vpop.eup %3156  ;;  %v3894_v22 = vmul.f32 %v1328_v13, %v944_v45  ;;  %v1329_v38 = vadd.f32 1.0, %v3155_v16  ;;  %v3930_v60 = vmul.f32 0.5, %v609_v19  ;;  %3176 = verf.f32 %v1086_v46 }
 0x120   : > { %v3159_v24 = vpop.eup %3158  ;;  %v3897_v26 = vmul.f32 %v1330_v17, %v946_v48  ;;  %v618_v34 = vpop.f32.mrb[12].mxu0  ;;  %v1331_v45 = vadd.f32 1.0, %v3157_v20  ;;  %v613_v61 = vadd.f32 %v612_v3, %v3845_v57  ;;  %v806_v62 = vadd.f32 %v805_v8, %v3847_v58 }
 0x121   : > { %v3161_v29 = vpop.eup %3160  ;;  %v1580_v30 = vpack.c.bf16 %v3894_v22, %v3885_v11  ;;  %v3908_v35 = vpop.f32.mrb[12].mxu1  ;;  %v1332_v40 = vadd.f32 1.0, %v3159_v24  ;;  %v1457_v44 = vmul.f32 %v1329_v38, %v3870_v53  ;;  %v3935_v10 = vmul.f32 0.5, %v802_v23 }
 0x122   : > { %v1582_v37 = vpack.c.bf16 %v3897_v26, %v3892_v21  ;;  %v3914_v41 = vpop.f32.mrb[13].mxu0  ;;  %v3916_v42 = vpop.f32.mrb[13].mxu1  ;;  %v1334_v49 = vadd.f32 1.0, %v3161_v29  ;;  %3178 = verf.f32 %v1085_v50  ;;  %v1459_v1 = vmul.f32 %v1331_v45, %v3872_v54 }
 0x123   : > { %v3163_v39 = vpop.eup %3162  ;;  %v3918_v47 = vpop.f32.mrb[14].mxu0  ;;  %v3939_v12 = vmul.f32 %v1332_v40, %v3875_v63  ;;  %v1087_v13 = vmul.f32 0.70710677, %v804_v51  ;;  %v1088_v16 = vmul.f32 0.70710677, %v613_v61  ;;  %v3944_v8 = vmul.f32 0.5, %v611_v28 }
 0x124   : > { %v3920_v48 = vpop.f32.mrb[14].mxu1  ;;  %v3926_v52 = vpop.f32.mrb[15].mxu0  ;;  %v1333_v4 = vadd.f32 1.0, %v3163_v39  ;;  %v3942_v18 = vmul.f32 %v1334_v49, %v3877_v5  ;;  %v1090_v19 = vmul.f32 0.70710677, %v806_v62  ;;  %v615_v23 = vadd.f32 %v3883_v9, %v3849_v2 }
 0x125   : > { %v3928_v55 = vpop.f32.mrb[15].mxu1  ;;  %v3165_v56 = vpop.eup %3164  ;;  %3180 = verf.f32 %v1087_v13  ;;  %v808_v54 = vadd.f32 %v3889_v15, %v3851_v59  ;;  %v3957_v25 = vmul.f32 0.5, %v804_v51  ;;  %v619_v27 = vadd.f32 %v618_v34, %v3845_v57 }
 0x126   : > { %v3167_v0 = vpop.eup %3166  ;;  %v1335_v3 = vadd.f32 1.0, %v3165_v56  ;;  %v3955_v5 = vmul.f32 %v1333_v4, %v3879_v6  ;;  %3182 = verf.f32 %v1088_v16  ;;  %v3964_v38 = vmul.f32 0.5, %v613_v61 }
 0x127   : > { %v3169_v17 = vpop.eup %3168  ;;  %v1336_v20 = vadd.f32 1.0, %v3167_v0  ;;  %3184 = verf.f32 %v1090_v19  ;;  %v1089_v15 = vmul.f32 0.70710677, %v615_v23  ;;  %v1091_v49 = vmul.f32 0.70710677, %v808_v54 }
 0x128   : > { %v3171_v53 = vpop.eup %3170  ;;  %v3950_v63 = vpop.f32.mrb[16].mxu0  ;;  %v1338_v9 = vadd.f32 1.0, %v3169_v17  ;;  %v3971_v40 = vmul.f32 %v1335_v3, %v3881_v7  ;;  %v1092_v34 = vmul.f32 0.70710677, %v619_v27  ;;  %v812_v61 = vadd.f32 %v3908_v35, %v3847_v58 }
 0x129   : > { %v3952_v24 = vpop.f32.mrb[16].mxu1  ;;  %v3960_v28 = vpop.f32.mrb[17].mxu0  ;;  %v1337_v46 = vadd.f32 1.0, %v3171_v53  ;;  %v3976_v56 = vmul.f32 %v1336_v20, %v3887_v14  ;;  %3186 = verf.f32 %v1089_v15  ;;  %v621_v0 = vadd.f32 %v3914_v41, %v3849_v2 }
 0x12a   : > { %v3962_v29 = vpop.f32.mrb[17].mxu1  ;;  %v3966_v39 = vpop.f32.mrb[18].mxu0  ;;  %3188 = verf.f32 %v1091_v49  ;;  %v814_v7 = vadd.f32 %v3916_v42, %v3851_v59  ;;  %v1581_v13 = vpack.c.bf16 %v1457_v44, %v3910_v36  ;;  %v1583_v16 = vpack.c.bf16 %v1459_v1, %v3923_v43 }
 0x12b   : > { %v3968_v45 = vpop.f32.mrb[18].mxu1  ;;  %v3173_v6 = vpop.eup %3172  ;;  %v3989_v14 = vmul.f32 %v1338_v9, %v3902_v31  ;;  %v3991_v19 = vmul.f32 0.5, %v806_v62  ;;  %v1094_v35 = vmul.f32 0.70710677, %v812_v61  ;;  %v3994_v41 = vmul.f32 %v1337_v46, %v3904_v32 }
 0x12c   : > { %v3973_v50 = vpop.f32.mrb[19].mxu0  ;;  %v3175_v51 = vpop.eup %3174  ;;  %v1339_v3 = vadd.f32 1.0, %v3173_v6  ;;  %3190 = verf.f32 %v1092_v34  ;;  %v1093_v15 = vmul.f32 0.70710677, %v621_v0  ;;  %1939 = vmatprep.mubr.bf16.mxu0 %v1581_v13  ;;  %2100 = vmatprep.mubr.bf16.mxu1 %v1583_v16  ;;  %v3996_v36 = vmul.f32 0.5, %v615_v23 }
 0x12d   : > { %v3982_v4 = vpop.f32.mrb[19].mxu1  ;;  %v3177_v17 = vpop.eup %3176  ;;  %v1340_v20 = vadd.f32 1.0, %v3175_v51  ;;  %v3998_v42 = vmul.f32 0.5, %v808_v54  ;;  %v1095_v43 = vmul.f32 0.70710677, %v814_v7  ;;  %v623_v31 = vadd.f32 %v3918_v47, %v3845_v57  ;;  %1940 = vmatmul.mubr.bf16.vlgmr.msra.gmra.mrb[64].mxu0 %v1580_v30  ;;  %2101 = vmatmul.mubr.bf16.vlgmr.msra.gmra.mrb[64].mxu1 %v1582_v37 }
 0x12e   : > { %v3179_v53 = vpop.eup %3178  ;;  %v1342_v44 = vadd.f32 1.0, %v3177_v17  ;;  %3192 = verf.f32 %v1094_v35  ;;  %v816_v1 = vadd.f32 %v3920_v48, %v3847_v58  ;;  %v625_v47 = vadd.f32 %v3926_v52, %v3849_v2 }
 0x12f   : > { %v3181_v22 = vpop.eup %3180  ;;  %v4021_v21 = vmul.f32 %v1339_v3, %v3906_v33  ;;  %v1341_v26 = vadd.f32 1.0, %v3179_v53  ;;  %3194 = verf.f32 %v1093_v15  ;;  %v1096_v30 = vmul.f32 0.70710677, %v623_v31 }
 0x130   : > { %v4008_v32 = vpop.f32.mrb[20].mxu0  ;;  %v4010_v62 = vpop.f32.mrb[20].mxu1  ;;  %v4028_v48 = vmul.f32 %v1340_v20, %v3930_v60  ;;  %v4030_v52 = vmul.f32 0.5, %v619_v27  ;;  %3196 = verf.f32 %v1095_v43  ;;  %v1098_v6 = vmul.f32 0.70710677, %v816_v1 }
 0x131   : > { %v4016_v23 = vpop.f32.mrb[21].mxu0  ;;  %v4018_v11 = vpop.f32.mrb[21].mxu1  ;;  %v4034_v33 = vmul.f32 0.5, %v812_v61  ;;  %v4036_v34 = vmul.f32 0.5, %v621_v0  ;;  %v1097_v51 = vmul.f32 0.70710677, %v625_v47  ;;  %v818_v13 = vadd.f32 %v3928_v55, %v3851_v59 }
 0x132   : > { %v4023_v37 = vpop.f32.mrb[22].mxu0  ;;  %v4025_v54 = vpop.f32.mrb[22].mxu1  ;;  %v4043_v60 = vmul.f32 %v1342_v44, %v3935_v10  ;;  %v4045_v27 = vmul.f32 0.5, %v814_v7  ;;  %3198 = verf.f32 %v1096_v30  ;;  %v629_v17 = vadd.f32 %v3950_v63, %v3845_v57 }
 0x133   : > { %v3183_v9 = vpop.eup %3182  ;;  %v4032_v46 = vpop.f32.mrb[23].mxu0  ;;  %v4050_v61 = vmul.f32 %v1341_v26, %v3944_v8  ;;  %v1343_v0 = vadd.f32 1.0, %v3181_v22  ;;  %3200 = verf.f32 %v1098_v6  ;;  %v1099_v35 = vmul.f32 0.70710677, %v818_v13 }
 0x134   : > { %v3185_v49 = vpop.eup %3184  ;;  %v4040_v16 = vpop.f32.mrb[23].mxu1  ;;  %v1344_v55 = vadd.f32 1.0, %v3183_v9  ;;  %3202 = verf.f32 %v1097_v51  ;;  %v1100_v15 = vmul.f32 0.70710677, %v629_v17  ;;  %v822_v7 = vadd.f32 %v3952_v24, %v3847_v58 }
 0x135   : > { %v3187_v3 = vpop.eup %3186  ;;  %v1346_v20 = vadd.f32 1.0, %v3185_v49  ;;  %3204 = verf.f32 %v1099_v35  ;;  %v631_v63 = vadd.f32 %v3960_v28, %v3849_v2  ;;  %v4060_v26 = vmul.f32 0.5, %v623_v31 }
 0x136   : > { %v3189_v53 = vpop.eup %3188  ;;  %v1345_v10 = vadd.f32 1.0, %v3187_v3  ;;  %3206 = verf.f32 %v1100_v15  ;;  %v824_v30 = vadd.f32 %v3962_v29, %v3851_v59  ;;  %v4069_v24 = vmul.f32 %v1343_v0, %v3957_v25 }
 0x137   : > { %v3191_v44 = vpop.eup %3190  ;;  %v1347_v22 = vadd.f32 1.0, %v3189_v53  ;;  %v4071_v28 = vmul.f32 0.5, %v816_v1  ;;  %v4073_v49 = vmul.f32 0.5, %v625_v47  ;;  %v1102_v51 = vmul.f32 0.70710677, %v822_v7 }
 0x138   : > { %v4056_v43 = vpop.f32.mrb[24].mxu0  ;;  %v4058_v8 = vpop.f32.mrb[24].mxu1  ;;  %v4080_v53 = vmul.f32 %v1344_v55, %v3964_v38  ;;  %v4083_v29 = vmul.f32 %v1346_v20, %v3991_v19  ;;  %v4085_v15 = vmul.f32 0.5, %v818_v13  ;;  %v4087_v25 = vmul.f32 0.5, %v629_v17 }
 0x139   : > { %v4064_v9 = vpop.f32.mrb[25].mxu0  ;;  %v4066_v6 = vpop.f32.mrb[25].mxu1  ;;  %v1585_v38 = vpack.c.bf16 %v3994_v41, %v3955_v5  ;;  %v4099_v19 = vmul.f32 %v1347_v22, %v3998_v42  ;;  %v4101_v13 = vmul.f32 0.5, %v822_v7  ;;  %v1103_v17 = vmul.f32 0.70710677, %v824_v30 }
 0x13a   : > { %5186 = vst [vmem:[#allocation3_spill] sm:$0xff] %v4066_v6  ;;  %v4075_v3 = vpop.f32.mrb[26].mxu0  ;;  %v4077_v31 = vpop.f32.mrb[26].mxu1  ;;  %v1101_v6 = vmul.f32 0.70710677, %v631_v63  ;;  %v1587_v20 = vpack.c.bf16 %v4021_v21, %v3971_v40  ;;  %3208 = verf.f32 %v1102_v51  ;;  %v1584_v42 = vpack.c.bf16 %v3976_v56, %v3939_v12 }
 0x13b   : > { %5187 = vst [vmem:[#allocation4_spill] sm:$0xff] %v4075_v3  ;;  %5188 = vst [vmem:[#allocation5_spill] sm:$0xff] %v4077_v31  ;;  %v3193_v35 = vpop.eup %3192  ;;  %v4089_v1 = vpop.f32.mrb[27].mxu0  ;;  %v4094_v3 = vmul.f32 %v1345_v10, %v3996_v36  ;;  %v1348_v31 = vadd.f32 1.0, %v3191_v44  ;;  %1947 = vmatprep.mubr.bf16.mxu0 %v1585_v38  ;;  %v633_v36 = vadd.f32 %v3966_v39, %v3845_v57  ;;  %v4109_v44 = vmul.f32 0.5, %v631_v63 }
 0x13c   : > { %v4091_v47 = vpop.f32.mrb[27].mxu1  ;;  %v3195_v0 = vpop.eup %3194  ;;  %v826_v10 = vadd.f32 %v3968_v45, %v3847_v58  ;;  %2108 = vmatprep.mubr.bf16.mxu1 %v1587_v20  ;;  %v1586_v40 = vpack.c.bf16 %v3989_v14, %v3942_v18  ;;  %3210 = verf.f32 %v1101_v6  ;;  %1948 = vmatmul.mubr.bf16.gmra.mrb[68].mxu0 %v1584_v42  ;;  %v635_v12 = vadd.f32 %v3973_v50, %v3849_v2 }
 0x13d   : > { %5189 = vst [vmem:[#allocation6_spill] sm:$0xff] %v4091_v47  ;;  %v3197_v55 = vpop.eup %3196  ;;  %v1350_v47 = vadd.f32 1.0, %v3193_v35  ;;  %v1349_v41 = vadd.f32 1.0, %v3195_v0  ;;  %v4116_v7 = vmul.f32 %v1348_v31, %v4030_v52  ;;  %v1104_v39 = vmul.f32 0.70710677, %v633_v36 }
 0x13e   : > { %v3199_v5 = vpop.eup %3198  ;;  %v1351_v22 = vadd.f32 1.0, %v3197_v55  ;;  %v4120_v35 = vmul.f32 0.5, %v824_v30  ;;  %3212 = verf.f32 %v1103_v17  ;;  %v1106_v63 = vmul.f32 0.70710677, %v826_v10  ;;  %2109 = vmatmul.mubr.bf16.gmra.mrb[68].mxu1 %v1586_v40 }
 0x13f   : > { %v3201_v21 = vpop.eup %3200  ;;  %v4129_v52 = vmul.f32 %v1350_v47, %v4034_v33  ;;  %3214 = verf.f32 %v1104_v39  ;;  %v828_v30 = vadd.f32 %v3982_v4, %v3851_v59  ;;  %v639_v6 = vadd.f32 %v4008_v32, %v3845_v57 }
 0x140   : > { %v4118_v51 = vpop.f32.mrb[28].mxu0  ;;  %v3203_v45 = vpop.eup %3202  ;;  %v4140_v38 = vmul.f32 %v1349_v41, %v4036_v34  ;;  %v1352_v55 = vadd.f32 1.0, %v3199_v5  ;;  %v1354_v17 = vadd.f32 1.0, %v3201_v21  ;;  %3216 = verf.f32 %v1106_v63 }
 0x141   : > { %v4124_v18 = vpop.f32.mrb[28].mxu1  ;;  %v4126_v56 = vpop.f32.mrb[29].mxu0  ;;  %v4147_v4 = vmul.f32 %v1351_v22, %v4045_v27  ;;  %v1353_v20 = vadd.f32 1.0, %v3203_v45  ;;  %v1105_v32 = vmul.f32 0.70710677, %v635_v12  ;;  %v4149_v39 = vmul.f32 0.5, %v633_v36 }
 0x142   : > { %v3205_v14 = vpop.eup %3204  ;;  %v4135_v31 = vpop.f32.mrb[29].mxu1  ;;  %v1107_v42 = vmul.f32 0.70710677, %v828_v30  ;;  %v832_v34 = vadd.f32 %v4010_v62, %v3847_v58  ;;  %v641_v21 = vadd.f32 %v4016_v23, %v3849_v2  ;;  %v834_v27 = vadd.f32 %v4018_v11, %v3851_v59 }
 0x143   : > { %v4137_v0 = vpop.f32.mrb[30].mxu0  ;;  %v3207_v50 = vpop.eup %3206  ;;  %v1355_v40 = vadd.f32 1.0, %v3205_v14  ;;  %3218 = verf.f32 %v1105_v32  ;;  %v4160_v22 = vmul.f32 %v1352_v55, %v4060_v26  ;;  %v4163_v36 = vmul.f32 %v1354_v17, %v4071_v28 }
 0x144   : > { %5190 = vst [vmem:[#allocation7_spill] sm:$0xff] %v4137_v0  ;;  %v4142_v33 = vpop.f32.mrb[30].mxu1  ;;  %v4144_v47 = vpop.f32.mrb[31].mxu0  ;;  %v1108_v0 = vmul.f32 0.70710677, %v639_v6  ;;  %v1356_v41 = vadd.f32 1.0, %v3207_v50  ;;  %v4168_v14 = vmul.f32 %v1353_v20, %v4073_v49  ;;  %3220 = verf.f32 %v1107_v42 }
 0x145   : > { %v4153_v5 = vpop.f32.mrb[31].mxu1  ;;  %v4165_v45 = vmul.f32 0.5, %v826_v10  ;;  %v1110_v63 = vmul.f32 0.70710677, %v832_v34  ;;  %v3209_v62 = vpop.eup %3208  ;;  %v4170_v50 = vmul.f32 0.5, %v635_v12  ;;  %v4177_v26 = vmul.f32 %v1355_v40, %v4085_v15 }
 0x146   : > { %v1109_v23 = vmul.f32 0.70710677, %v641_v21  ;;  %v4179_v28 = vmul.f32 0.5, %v828_v30  ;;  %v4181_v10 = vmul.f32 0.5, %v639_v6  ;;  %3222 = verf.f32 %v1108_v0  ;;  %v3211_v12 = vpop.eup %3210 }
 0x147   : > { %v4188_v17 = vmul.f32 %v1356_v41, %v4087_v25  ;;  %3224 = verf.f32 %v1110_v63  ;;  %v1111_v20 = vmul.f32 0.70710677, %v834_v27  ;;  %v1589_v42 = vpack.c.bf16 %v4094_v3, %v4050_v61 }
 0x148   : > { %v4172_v32 = vpop.f32.mrb[32].mxu0  ;;  %v4174_v11 = vpop.f32.mrb[32].mxu1  ;;  %v1358_v40 = vadd.f32 1.0, %v3209_v62  ;;  %v1591_v0 = vpack.c.bf16 %v4099_v19, %v4069_v24  ;;  %v836_v25 = vadd.f32 %v4025_v54, %v3847_v58  ;;  %3226 = verf.f32 %v1109_v23 }
 0x149   : > { %v4183_v55 = vpop.f32.mrb[33].mxu0  ;;  %v4185_v49 = vpop.f32.mrb[33].mxu1  ;;  %1955 = vmatprep.mubr.bf16.mxu0 %v1589_v42  ;;  %v1588_v3 = vpack.c.bf16 %v4080_v53, %v4028_v48  ;;  %v1590_v62 = vpack.c.bf16 %v4083_v29, %v4043_v60  ;;  %v645_v24 = vadd.f32 %v4032_v46, %v3849_v2  ;;  %v1357_v19 = vadd.f32 1.0, %v3211_v12 }
 0x14a   : > { %5191 = vst [vmem:[#allocation8_spill] sm:$0xff] %v4185_v49  ;;  %v4192_v15 = vpop.f32.mrb[34].mxu0  ;;  %v4194_v30 = vpop.f32.mrb[34].mxu1  ;;  %v643_v49 = vadd.f32 %v4023_v37, %v3845_v57  ;;  %3228 = verf.f32 %v1111_v20  ;;  %2116 = vmatprep.mubr.bf16.mxu1 %v1591_v0  ;;  %v1114_v23 = vmul.f32 0.70710677, %v836_v25  ;;  %v4217_v53 = vmul.f32 %v1358_v40, %v4101_v13 }
 0x14b   : > { %5192 = vst [vmem:[#allocation9_spill] sm:$0xff] %v4194_v30  ;;  %v3213_v6 = vpop.eup %3212  ;;  %v4202_v41 = vpop.f32.mrb[35].mxu0  ;;  %v4212_v30 = vmul.f32 0.5, %v832_v34  ;;  %1956 = vmatmul.mubr.bf16.gmra.mrb[72].mxu0 %v1588_v3  ;;  %2117 = vmatmul.mubr.bf16.gmra.mrb[72].mxu1 %v1590_v62  ;;  %v1113_v48 = vmul.f32 0.70710677, %v645_v24  ;;  %v838_v46 = vadd.f32 %v4040_v16, %v3851_v59  ;;  %v649_v60 = vadd.f32 %v4056_v43, %v3845_v57 }
 0x14c   : > { %5193 = vst [vmem:[#allocation10_spill] sm:$0xff] %v4202_v41  ;;  %v4204_v63 = vpop.f32.mrb[35].mxu1  ;;  %v3215_v61 = vpop.eup %3214  ;;  %v1112_v54 = vmul.f32 0.70710677, %v643_v49  ;;  %v4214_v41 = vmul.f32 0.5, %v641_v21  ;;  %v842_v21 = vadd.f32 %v4058_v8, %v3847_v58  ;;  %v4230_v13 = vmul.f32 %v1357_v19, %v4109_v44 }
 0x14d   : > { %5194 = vst [vmem:[#allocation11_spill] sm:$0xff] %v4204_v63  ;;  %v3217_v37 = vpop.eup %3216  ;;  %v1359_v63 = vadd.f32 1.0, %v3213_v6  ;;  %v1360_v34 = vadd.f32 1.0, %v3215_v61  ;;  %v4232_v6 = vmul.f32 0.5, %v834_v27  ;;  %v1115_v16 = vmul.f32 0.70710677, %v838_v46 }
 0x14e   : > { %3230 = verf.f32 %v1112_v54  ;;  %v3219_v29 = vpop.eup %3218  ;;  %v1362_v12 = vadd.f32 1.0, %v3217_v37  ;;  %v651_v43 = vadd.f32 %v4064_v9, %v3849_v2  ;;  %v4243_v3 = vmul.f32 0.5, %v643_v49 }
 0x14f   : > { %3232 = verf.f32 %v1114_v23  ;;  %v3221_v61 = vpop.eup %3220  ;;  %v4241_v8 = vmul.f32 %v1359_v63, %v4120_v35  ;;  %v1116_v62 = vmul.f32 0.70710677, %v649_v60  ;;  %v1361_v37 = vadd.f32 1.0, %v3219_v29 }
 0x150   : > { %v4225_v20 = vpop.f32.mrb[36].mxu0  ;;  %v4227_v42 = vpop.f32.mrb[36].mxu1  ;;  %3234 = verf.f32 %v1113_v48  ;;  %v4247_v19 = vmul.f32 0.5, %v836_v25  ;;  %v4249_v54 = vmul.f32 0.5, %v645_v24  ;;  %v4256_v35 = vmul.f32 %v1360_v34, %v4149_v39 }
 0x151   : > { %v4236_v40 = vpop.f32.mrb[37].mxu0  ;;  %v4238_v0 = vpop.f32.mrb[37].mxu1  ;;  %3236 = verf.f32 %v1115_v16  ;;  %v4259_v49 = vmul.f32 %v1362_v12, %v4165_v45  ;;  %v4261_v63 = vmul.f32 0.5, %v838_v46  ;;  %v1118_v48 = vmul.f32 0.70710677, %v842_v21 }
 0x152   : > { %5195 = vst [vmem:[#allocation12_spill] sm:$0xff] %v4236_v40  ;;  %5196 = vst [vmem:[#allocation13_spill] sm:$0xff] %v4238_v0  ;;  %v4245_v44 = vpop.f32.mrb[38].mxu0  ;;  %v3223_v27 = vpop.eup %3222  ;;  %v1363_v25 = vadd.f32 1.0, %v3221_v61  ;;  %v4265_v24 = vmul.f32 0.5, %v649_v60  ;;  %3238 = verf.f32 %v1116_v62  ;;  %v1593_v45 = vpack.c.bf16 %v4168_v14, %v4140_v38  ;;  %v5202_v62 = vld [vmem:[#allocation4_spill] sm:$0xff] }
 0x153   : > { %5197 = vst [vmem:[#allocation14_spill] sm:$0xff] %v4245_v44  ;;  %v4251_v9 = vpop.f32.mrb[38].mxu1  ;;  %v4253_v23 = vpop.f32.mrb[39].mxu0  ;;  %v1117_v16 = vmul.f32 0.70710677, %v651_v43  ;;  %v4267_v44 = vmul.f32 0.5, %v842_v21  ;;  %v1595_v46 = vpack.c.bf16 %v4177_v26, %v4147_v4  ;;  %v4276_v12 = vmul.f32 %v1361_v37, %v4170_v50 }
 0x154   : > { %5198 = vst [vmem:[#allocation15_spill] sm:$0xff] %v4251_v9  ;;  %5199 = vst [vmem:[#allocation16_spill] sm:$0xff] %v4253_v23  ;;  %v3225_v0 = vpop.eup %3224  ;;  %v4263_v29 = vpop.f32.mrb[39].mxu1  ;;  %v5201_v23 = vld [vmem:[#allocation3_spill] sm:$0xff]  ;;  %v1364_v60 = vadd.f32 1.0, %v3223_v27  ;;  %3240 = verf.f32 %v1118_v48  ;;  %1963 = vmatprep.mubr.bf16.mxu0 %v1593_v45  ;;  %v1592_v38 = vpack.c.bf16 %v4160_v22, %v4116_v7  ;;  %v1594_v27 = vpack.c.bf16 %v4163_v36, %v4129_v52  ;;  %v5206_v36 = vld [vmem:[#allocation6_spill] sm:$0xff] }
 0x155   : > { %5200 = vst [vmem:[#allocation17_spill] sm:$0xff] %v4263_v29  ;;  %v3227_v9 = vpop.eup %3226  ;;  %v844_v39 = vadd.f32 %v5201_v23, %v3851_v59  ;;  %v1366_v61 = vadd.f32 1.0, %v3225_v0  ;;  %v653_v29 = vadd.f32 %v5202_v62, %v3845_v57  ;;  %2124 = vmatprep.mubr.bf16.mxu1 %v1595_v46  ;;  %v5203_v23 = vld [vmem:[#allocation5_spill] sm:$0xff]  ;;  %3242 = verf.f32 %v1117_v16 }
 0x156   : > { %v3229_v34 = vpop.eup %3228  ;;  %v846_v40 = vadd.f32 %v5203_v23, %v3847_v58  ;;  %v1365_v26 = vadd.f32 1.0, %v3227_v9  ;;  %v4295_v46 = vmul.f32 %v1363_v25, %v4179_v28  ;;  %1964 = vmatmul.mubr.bf16.gmra.mrb[76].mxu0 %v1592_v38  ;;  %v4301_v16 = vmul.f32 0.5, %v651_v43  ;;  %2125 = vmatmul.mubr.bf16.gmra.mrb[76].mxu1 %v1594_v27 }
 0x157   : > { %v1119_v21 = vmul.f32 0.70710677, %v844_v39  ;;  %v1120_v0 = vmul.f32 0.70710677, %v653_v29  ;;  %v1367_v7 = vadd.f32 1.0, %v3229_v34  ;;  %v655_v52 = vadd.f32 %v4089_v1, %v3849_v2 }
 0x158   : > { %v4284_v4 = vpop.f32.mrb[40].mxu0  ;;  %v4286_v14 = vpop.f32.mrb[40].mxu1  ;;  %v1122_v22 = vmul.f32 0.70710677, %v846_v40  ;;  %v848_v23 = vadd.f32 %v5206_v36, %v3851_v59  ;;  %v659_v43 = vadd.f32 %v4118_v51, %v3845_v57  ;;  %v4317_v27 = vmul.f32 %v1366_v61, %v4212_v30 }
 0x159   : > { %v3231_v50 = vpop.eup %3230  ;;  %v4290_v37 = vpop.f32.mrb[41].mxu0  ;;  %3244 = verf.f32 %v1119_v21  ;;  %v4312_v21 = vmul.f32 %v1364_v60, %v4181_v10  ;;  %v4320_v1 = vmul.f32 %v1365_v26, %v4214_v41  ;;  %v4327_v10 = vmul.f32 0.5, %v653_v29 }
 0x15a   : > { %v4292_v48 = vpop.f32.mrb[41].mxu1  ;;  %v3233_v45 = vpop.eup %3232  ;;  %3246 = verf.f32 %v1120_v0  ;;  %v1368_v38 = vadd.f32 1.0, %v3231_v50  ;;  %v1123_v60 = vmul.f32 0.70710677, %v848_v23  ;;  %v4329_v51 = vmul.f32 0.5, %v846_v40 }
 0x15b   : > { %v4297_v62 = vpop.f32.mrb[42].mxu0  ;;  %v4299_v9 = vpop.f32.mrb[42].mxu1  ;;  %3248 = verf.f32 %v1122_v22  ;;  %v1370_v36 = vadd.f32 1.0, %v3233_v45  ;;  %v852_v30 = vadd.f32 %v4124_v18, %v3847_v58  ;;  %v4345_v40 = vmul.f32 0.5, %v655_v52 }
 0x15c   : > { %5204 = vst [vmem:[#allocation3_spill] sm:$0xff] %v4297_v62  ;;  %5205 = vst [vmem:[#allocation4_spill] sm:$0xff] %v4299_v9  ;;  %v4307_v28 = vpop.f32.mrb[43].mxu0  ;;  %v4309_v25 = vpop.f32.mrb[43].mxu1  ;;  %v4325_v9 = vmul.f32 0.5, %v844_v39  ;;  %v4334_v41 = vmul.f32 %v1368_v38, %v4243_v3 }
 0x15d   : > { %5207 = vst [vmem:[#allocation5_spill] sm:$0xff] %v4307_v28  ;;  %5208 = vst [vmem:[#allocation6_spill] sm:$0xff] %v4309_v25  ;;  %v3235_v34 = vpop.eup %3234  ;;  %v1121_v28 = vmul.f32 0.70710677, %v655_v52  ;;  %v4323_v25 = vmul.f32 %v1367_v7, %v4232_v6  ;;  %v1124_v62 = vmul.f32 0.70710677, %v659_v43  ;;  %v661_v6 = vadd.f32 %v4126_v56, %v3849_v2 }
 0x15e   : > { %v3237_v0 = vpop.eup %3236  ;;  %v1369_v22 = vadd.f32 1.0, %v3235_v34  ;;  %v4343_v26 = vmul.f32 %v1370_v36, %v4247_v19  ;;  %v1126_v45 = vmul.f32 0.70710677, %v852_v30  ;;  %v4351_v34 = vmul.f32 0.5, %v848_v23 }
 0x15f   : > { %v3239_v50 = vpop.eup %3238  ;;  %v1371_v61 = vadd.f32 1.0, %v3237_v0  ;;  %3250 = verf.f32 %v1121_v28  ;;  %v1125_v56 = vmul.f32 0.70710677, %v661_v6  ;;  %v854_v36 = vadd.f32 %v4135_v31, %v3851_v59 }
 0x160   : > { %v4338_v39 = vpop.f32.mrb[44].mxu0  ;;  %v4340_v29 = vpop.f32.mrb[44].mxu1  ;;  %3252 = verf.f32 %v1123_v60  ;;  %v1372_v28 = vadd.f32 1.0, %v3239_v50  ;;  %v4358_v52 = vmul.f32 %v1369_v22, %v4249_v54  ;;  %v1597_v60 = vpack.c.bf16 %v4276_v12, %v4230_v13  ;;  %v5214_v54 = vld [vmem:[#allocation7_spill] sm:$0xff] }
 0x161   : > { %v4347_v18 = vpop.f32.mrb[45].mxu0  ;;  %v4349_v3 = vpop.f32.mrb[45].mxu1  ;;  %3254 = verf.f32 %v1124_v62  ;;  %v1599_v23 = vpack.c.bf16 %v4295_v46, %v4241_v8  ;;  %v663_v22 = vadd.f32 %v5214_v54, %v3845_v57  ;;  %v856_v31 = vadd.f32 %v4142_v33, %v3847_v58 }
 0x162   : > { %5209 = vst [vmem:[#allocation18_spill] sm:$0xff] %v4349_v3  ;;  %v3241_v7 = vpop.eup %3240  ;;  %v4353_v38 = vpop.f32.mrb[46].mxu0  ;;  %v4373_v3 = vmul.f32 0.5, %v659_v43  ;;  %3256 = verf.f32 %v1126_v45  ;;  %v1127_v8 = vmul.f32 0.70710677, %v854_v36  ;;  %1971 = vmatprep.mubr.bf16.mxu0 %v1597_v60  ;;  %v1596_v46 = vpack.c.bf16 %v4256_v35, %v4188_v17 }
 0x163   : > { %5210 = vst [vmem:[#allocation19_spill] sm:$0xff] %v4353_v38  ;;  %v4355_v0 = vpop.f32.mrb[46].mxu1  ;;  %v3243_v19 = vpop.eup %3242  ;;  %v1374_v12 = vadd.f32 1.0, %v3241_v7  ;;  %2132 = vmatprep.mubr.bf16.mxu1 %v1599_v23  ;;  %v4384_v43 = vmul.f32 0.5, %v852_v30  ;;  %3258 = verf.f32 %v1125_v56  ;;  %v1130_v33 = vmul.f32 0.70710677, %v856_v31 }
 0x164   : > { %5211 = vst [vmem:[#allocation20_spill] sm:$0xff] %v4355_v0  ;;  %v4366_v50 = vpop.f32.mrb[47].mxu0  ;;  %v4368_v62 = vpop.f32.mrb[47].mxu1  ;;  %v4371_v0 = vmul.f32 %v1371_v61, %v4261_v63  ;;  %v4382_v63 = vmul.f32 %v1372_v28, %v4265_v24  ;;  %v1128_v61 = vmul.f32 0.70710677, %v663_v22  ;;  %v1373_v54 = vadd.f32 1.0, %v3243_v19  ;;  %1972 = vmatmul.mubr.bf16.gmra.mrb[80].mxu0 %v1596_v46 }
 0x165   : > { %5212 = vst [vmem:[#allocation21_spill] sm:$0xff] %v4366_v50  ;;  %5213 = vst [vmem:[#allocation22_spill] sm:$0xff] %v4368_v62  ;;  %v3245_v38 = vpop.eup %3244  ;;  %3260 = verf.f32 %v1127_v8  ;;  %v1598_v7 = vpack.c.bf16 %v4259_v49, %v4217_v53  ;;  %v665_v17 = vadd.f32 %v4144_v47, %v3849_v2  ;;  %v858_v28 = vadd.f32 %v4153_v5, %v3851_v59 }
 0x166   : > { %v3247_v13 = vpop.eup %3246  ;;  %v1375_v50 = vadd.f32 1.0, %v3245_v38  ;;  %3262 = verf.f32 %v1128_v61  ;;  %v669_v56 = vadd.f32 %v4172_v32, %v3845_v57  ;;  %v4403_v49 = vmul.f32 %v1374_v12, %v4267_v44 }
 0x167   : > { %v3249_v62 = vpop.eup %3248  ;;  %v1376_v45 = vadd.f32 1.0, %v3247_v13  ;;  %3264 = verf.f32 %v1130_v33  ;;  %v4405_v47 = vmul.f32 0.5, %v661_v6  ;;  %2133 = vmatmul.mubr.bf16.gmra.mrb[80].mxu1 %v1598_v7  ;;  %v1129_v60 = vmul.f32 0.70710677, %v665_v17 }
 0x168   : > { %v4390_v35 = vpop.f32.mrb[48].mxu0  ;;  %v4392_v24 = vpop.f32.mrb[48].mxu1  ;;  %v1378_v30 = vadd.f32 1.0, %v3249_v62  ;;  %v862_v23 = vadd.f32 %v4174_v11, %v3847_v58  ;;  %v4414_v13 = vmul.f32 %v1373_v54, %v4301_v16  ;;  %v4416_v8 = vmul.f32 0.5, %v854_v36 }
 0x169   : > { %v4398_v38 = vpop.f32.mrb[49].mxu0  ;;  %v4400_v19 = vpop.f32.mrb[49].mxu1  ;;  %v4418_v46 = vmul.f32 0.5, %v663_v22  ;;  %v1131_v44 = vmul.f32 0.70710677, %v858_v28  ;;  %v4423_v61 = vmul.f32 %v1375_v50, %v4325_v9  ;;  %v4425_v11 = vmul.f32 0.5, %v856_v31 }
 0x16a   : > { %v3251_v53 = vpop.eup %3250  ;;  %v4409_v62 = vpop.f32.mrb[50].mxu0  ;;  %3266 = verf.f32 %v1129_v60  ;;  %v1132_v33 = vmul.f32 0.70710677, %v669_v56  ;;  %v4430_v16 = vmul.f32 %v1376_v45, %v4327_v10  ;;  %v4433_v36 = vmul.f32 %v1378_v30, %v4329_v51  ;;  %v5218_v60 = vld [vmem:[#allocation8_spill] sm:$0xff] }
 0x16b   : > { %v4411_v5 = vpop.f32.mrb[50].mxu1  ;;  %v3253_v32 = vpop.eup %3252  ;;  %v1377_v22 = vadd.f32 1.0, %v3251_v53  ;;  %v1134_v54 = vmul.f32 0.70710677, %v862_v23  ;;  %3268 = verf.f32 %v1131_v44  ;;  %v671_v9 = vadd.f32 %v4183_v55, %v3849_v2 }
 0x16c   : > { %5215 = vst [vmem:[#allocation7_spill] sm:$0xff] %v4411_v5  ;;  %v4420_v6 = vpop.f32.mrb[51].mxu0  ;;  %v3255_v12 = vpop.eup %3254  ;;  %v1379_v5 = vadd.f32 1.0, %v3253_v32  ;;  %3270 = verf.f32 %v1132_v33  ;;  %v1601_v10 = vpack.c.bf16 %v4358_v52, %v4320_v1  ;;  %v4443_v45 = vmul.f32 0.5, %v858_v28 }
 0x16d   : > { %5216 = vst [vmem:[#allocation23_spill] sm:$0xff] %v4420_v6  ;;  %v4427_v7 = vpop.f32.mrb[51].mxu1  ;;  %v4435_v6 = vmul.f32 0.5, %v665_v17  ;;  %v3257_v50 = vpop.eup %3256  ;;  %v1380_v31 = vadd.f32 1.0, %v3255_v12  ;;  %v4445_v30 = vmul.f32 0.5, %v669_v56  ;;  %v1603_v53 = vpack.c.bf16 %v4371_v0, %v4323_v25 }
 0x16e   : > { %5217 = vst [vmem:[#allocation24_spill] sm:$0xff] %v4427_v7  ;;  %v864_v7 = vadd.f32 %v5218_v60, %v3851_v59  ;;  %v3259_v51 = vpop.eup %3258  ;;  %v1133_v17 = vmul.f32 0.70710677, %v671_v9  ;;  %v4454_v12 = vmul.f32 %v1377_v22, %v4345_v40  ;;  %3272 = verf.f32 %v1134_v54  ;;  %1979 = vmatprep.mubr.bf16.mxu0 %v1601_v10  ;;  %v5222_v40 = vld [vmem:[#allocation9_spill] sm:$0xff] }
 0x16f   : > { %v3261_v44 = vpop.eup %3260  ;;  %v673_v1 = vadd.f32 %v4192_v15, %v3845_v57  ;;  %v4463_v25 = vmul.f32 %v1379_v5, %v4351_v34  ;;  %v4465_v0 = vmul.f32 0.5, %v862_v23  ;;  %2140 = vmatprep.mubr.bf16.mxu1 %v1603_v53  ;;  %v866_v22 = vadd.f32 %v5222_v40, %v3847_v58 }
 0x170   : > { %v4449_v32 = vpop.f32.mrb[52].mxu0  ;;  %v4451_v55 = vpop.f32.mrb[52].mxu1  ;;  %v1135_v33 = vmul.f32 0.70710677, %v864_v7  ;;  %v1600_v54 = vpack.c.bf16 %v4334_v41, %v4312_v21  ;;  %3274 = verf.f32 %v1133_v17  ;;  %v1381_v53 = vadd.f32 1.0, %v3259_v51 }
 0x171   : > { %5219 = vst [vmem:[#allocation8_spill] sm:$0xff] %v4451_v55  ;;  %v4458_v52 = vpop.f32.mrb[53].mxu0  ;;  %v4460_v28 = vpop.f32.mrb[53].mxu1  ;;  %v1136_v34 = vmul.f32 0.70710677, %v673_v1  ;;  %v1383_v40 = vadd.f32 1.0, %v3261_v44  ;;  %v1602_v41 = vpack.c.bf16 %v4343_v26, %v4317_v27  ;;  %v679_v51 = vadd.f32 %v4225_v20, %v3845_v57 }
 0x172   : > { %5220 = vst [vmem:[#allocation25_spill] sm:$0xff] %v4458_v52  ;;  %5221 = vst [vmem:[#allocation26_spill] sm:$0xff] %v4460_v28  ;;  %v3263_v56 = vpop.eup %3262  ;;  %v4471_v60 = vpop.f32.mrb[54].mxu0  ;;  %v4476_v28 = vmul.f32 %v1380_v31, %v4373_v3  ;;  %v1382_v52 = vadd.f32 1.0, %v3257_v50  ;;  %3276 = verf.f32 %v1135_v33  ;;  %v1138_v55 = vmul.f32 0.70710677, %v866_v22  ;;  %1980 = vmatmul.mubr.bf16.gmra.mrb[84].mxu0 %v1600_v54 }
 0x173   : > { %v4473_v15 = vpop.f32.mrb[54].mxu1  ;;  %v3265_v10 = vpop.eup %3264  ;;  %v1384_v21 = vadd.f32 1.0, %v3263_v56  ;;  %3278 = verf.f32 %v1136_v34  ;;  %v5225_v3 = vld [vmem:[#allocation10_spill] sm:$0xff]  ;;  %v4493_v33 = vmul.f32 0.5, %v671_v9  ;;  %2141 = vmatmul.mubr.bf16.gmra.mrb[84].mxu1 %v1602_v41  ;;  %v872_v27 = vadd.f32 %v4227_v42, %v3847_v58 }
 0x174   : > { %5223 = vst [vmem:[#allocation9_spill] sm:$0xff] %v4473_v15  ;;  %v4478_v23 = vpop.f32.mrb[55].mxu0  ;;  %v4480_v5 = vpop.f32.mrb[55].mxu1  ;;  %v675_v31 = vadd.f32 %v5225_v3, %v3849_v2  ;;  %v1386_v17 = vadd.f32 1.0, %v3265_v10  ;;  %3280 = verf.f32 %v1138_v55  ;;  %v4491_v44 = vmul.f32 %v1382_v52, %v4384_v43 }
 0x175   : > { %5224 = vst [vmem:[#allocation27_spill] sm:$0xff] %v4478_v23  ;;  %v3267_v50 = vpop.eup %3266  ;;  %v5226_v23 = vld [vmem:[#allocation11_spill] sm:$0xff]  ;;  %v4498_v54 = vmul.f32 %v1381_v53, %v4405_v47  ;;  %v4500_v55 = vmul.f32 0.5, %v864_v7  ;;  %v4502_v10 = vmul.f32 0.5, %v673_v1  ;;  %v4507_v9 = vmul.f32 %v1383_v40, %v4416_v8 }
 0x176   : > { %v868_v15 = vadd.f32 %v5226_v23, %v3851_v59  ;;  %v1137_v56 = vmul.f32 0.70710677, %v675_v31  ;;  %v3269_v26 = vpop.eup %3268  ;;  %v1385_v52 = vadd.f32 1.0, %v3267_v50  ;;  %v4509_v23 = vmul.f32 0.5, %v866_v22 }
 0x177   : > { %v3271_v43 = vpop.eup %3270  ;;  %v4516_v47 = vmul.f32 %v1384_v21, %v4418_v46  ;;  %v4519_v7 = vmul.f32 %v1386_v17, %v4425_v11  ;;  %v1140_v1 = vmul.f32 0.70710677, %v679_v51  ;;  %v1387_v22 = vadd.f32 1.0, %v3269_v26  ;;  %v5235_v21 = vld [vmem:[#allocation13_spill] sm:$0xff] }
 0x178   : > { %v1139_v34 = vmul.f32 0.70710677, %v868_v15  ;;  %v4504_v20 = vpop.f32.mrb[56].mxu0  ;;  %3282 = verf.f32 %v1137_v56  ;;  %v4511_v42 = vpop.f32.mrb[56].mxu1  ;;  %v4525_v3 = vmul.f32 0.5, %v675_v31  ;;  %v5232_v56 = vld [vmem:[#allocation12_spill] sm:$0xff]  ;;  %v874_v17 = vadd.f32 %v5235_v21, %v3851_v59 }
 0x179   : > { %5227 = vst [vmem:[#allocation10_spill] sm:$0xff] %v4504_v20  ;;  %5228 = vst [vmem:[#allocation11_spill] sm:$0xff] %v4511_v42  ;;  %v4513_v41 = vpop.f32.mrb[57].mxu0  ;;  %v4521_v53 = vpop.f32.mrb[57].mxu1  ;;  %v1142_v50 = vmul.f32 0.70710677, %v872_v27  ;;  %v1607_v26 = vpack.c.bf16 %v4463_v25, %v4423_v61  ;;  %v4551_v25 = vmul.f32 %v1387_v22, %v4443_v45 }
 0x17a   : > { %5229 = vst [vmem:[#allocation28_spill] sm:$0xff] %v4513_v41  ;;  %3284 = verf.f32 %v1139_v34  ;;  %5230 = vst [vmem:[#allocation29_spill] sm:$0xff] %v4521_v53  ;;  %v4523_v8 = vpop.f32.mrb[58].mxu0  ;;  %v3273_v40 = vpop.eup %3272  ;;  %v681_v41 = vadd.f32 %v5232_v56, %v3849_v2  ;;  %v1388_v11 = vadd.f32 1.0, %v3271_v43  ;;  %v1605_v34 = vpack.c.bf16 %v4454_v12, %v4414_v13  ;;  %v5236_v13 = vld [vmem:[#allocation14_spill] sm:$0xff] }
 0x17b   : > { %5231 = vst [vmem:[#allocation30_spill] sm:$0xff] %v4523_v8  ;;  %v4529_v42 = vpop.f32.mrb[58].mxu1  ;;  %v4531_v46 = vpop.f32.mrb[59].mxu0  ;;  %v4542_v53 = vmul.f32 %v1385_v52, %v4435_v6  ;;  %v4544_v56 = vmul.f32 0.5, %v868_v15  ;;  %v1390_v20 = vadd.f32 1.0, %v3273_v40  ;;  %3286 = verf.f32 %v1140_v1  ;;  %2148 = vmatprep.mubr.bf16.mxu1 %v1607_v26  ;;  %v5237_v6 = vld [vmem:[#allocation15_spill] sm:$0xff] }
 0x17c   : > { %5233 = vst [vmem:[#allocation12_spill] sm:$0xff] %v4529_v42  ;;  %5234 = vst [vmem:[#allocation31_spill] sm:$0xff] %v4531_v46  ;;  %v4539_v31 = vpop.f32.mrb[59].mxu1  ;;  %v3275_v8 = vpop.eup %3274  ;;  %v4546_v42 = vmul.f32 0.5, %v679_v51  ;;  %v1141_v43 = vmul.f32 0.70710677, %v681_v41  ;;  %1987 = vmatprep.mubr.bf16.mxu0 %v1605_v34  ;;  %v683_v61 = vadd.f32 %v5236_v13, %v3845_v57  ;;  %3288 = verf.f32 %v1142_v50 }
 0x17d   : > { %v3277_v46 = vpop.eup %3276  ;;  %v1143_v21 = vmul.f32 0.70710677, %v874_v17  ;;  %v876_v15 = vadd.f32 %v5237_v6, %v3847_v58  ;;  %v1604_v51 = vpack.c.bf16 %v4430_v16, %v4382_v63  ;;  %v4558_v1 = vmul.f32 %v1388_v11, %v4445_v30  ;;  %v5239_v16 = vld [vmem:[#allocation16_spill] sm:$0xff] }
 0x17e   : > { %v3279_v12 = vpop.eup %3278  ;;  %v1389_v40 = vadd.f32 1.0, %v3275_v8  ;;  %v4560_v34 = vmul.f32 0.5, %v872_v27  ;;  %3290 = verf.f32 %v1141_v43  ;;  %v1391_v45 = vadd.f32 1.0, %v3277_v46  ;;  %v5240_v27 = vld [vmem:[#allocation17_spill] sm:$0xff] }
 0x17f   : > { %v3281_v52 = vpop.eup %3280  ;;  %3292 = verf.f32 %v1143_v21  ;;  %v1144_v22 = vmul.f32 0.70710677, %v683_v61  ;;  %v1146_v50 = vmul.f32 0.70710677, %v876_v15  ;;  %1988 = vmatmul.mubr.bf16.gmra.mrb[88].mxu0 %v1604_v51  ;;  %v4567_v6 = vmul.f32 %v1390_v20, %v4465_v0 }
 0x180   : > { %v4562_v26 = vpop.f32.mrb[60].mxu0  ;;  %v4564_v13 = vpop.f32.mrb[60].mxu1  ;;  %v1606_v63 = vpack.c.bf16 %v4433_v36, %v4403_v49  ;;  %v685_v30 = vadd.f32 %v5239_v16, %v3849_v2  ;;  %v878_v8 = vadd.f32 %v5240_v27, %v3851_v59  ;;  %v1392_v21 = vadd.f32 1.0, %v3279_v12 }
 0x181   : > { %5238 = vst [vmem:[#allocation13_spill] sm:$0xff] %v4564_v13  ;;  %v4575_v11 = vpop.f32.mrb[61].mxu0  ;;  %v4577_v43 = vpop.f32.mrb[61].mxu1  ;;  %v1394_v13 = vadd.f32 1.0, %v3281_v52  ;;  %3294 = verf.f32 %v1144_v22  ;;  %v689_v0 = vadd.f32 %v4284_v4, %v3845_v57  ;;  %v4585_v51 = vmul.f32 0.5, %v681_v41 }
 0x182   : > { %5241 = vst [vmem:[#allocation14_spill] sm:$0xff] %v4577_v43  ;;  %v3283_v46 = vpop.eup %3282  ;;  %v4581_v20 = vpop.f32.mrb[62].mxu0  ;;  %3296 = verf.f32 %v1146_v50  ;;  %2149 = vmatmul.mubr.bf16.gmra.mrb[88].mxu1 %v1606_v63  ;;  %v1145_v16 = vmul.f32 0.70710677, %v685_v30  ;;  %v882_v27 = vadd.f32 %v4286_v14, %v3847_v58  ;;  %v4594_v52 = vmul.f32 %v1389_v40, %v4493_v33 }
 0x183   : > { %5242 = vst [vmem:[#allocation15_spill] sm:$0xff] %v4581_v20  ;;  %v4583_v49 = vpop.f32.mrb[62].mxu1  ;;  %v4589_v43 = vpop.f32.mrb[63].mxu0  ;;  %v4597_v4 = vmul.f32 %v1391_v45, %v4500_v55  ;;  %v4599_v22 = vmul.f32 0.5, %v874_v17  ;;  %v1147_v41 = vmul.f32 0.70710677, %v878_v8  ;;  %v4606_v14 = vmul.f32 %v1392_v21, %v4502_v10 }
 0x184   : > { %5243 = vst [vmem:[#allocation16_spill] sm:$0xff] %v4583_v49  ;;  %v3285_v36 = vpop.eup %3284  ;;  %v4591_v12 = vpop.f32.mrb[63].mxu1  ;;  %v1393_v49 = vadd.f32 1.0, %v3283_v46  ;;  %v4601_v50 = vmul.f32 0.5, %v683_v61  ;;  %v4603_v63 = vmul.f32 0.5, %v876_v15  ;;  %3298 = verf.f32 %v1145_v16 }
 0x185   : > { %5244 = vst [vmem:[#allocation17_spill] sm:$0xff] %v4591_v12  ;;  %v1148_v20 = vmul.f32 0.70710677, %v689_v0  ;;  %v4609_v12 = vmul.f32 %v1394_v13, %v4509_v23  ;;  %v1395_v33 = vadd.f32 1.0, %v3285_v36  ;;  %v3287_v40 = vpop.eup %3286  ;;  %v4611_v55 = vmul.f32 0.5, %v685_v30 }
 0x186   : > { %3300 = verf.f32 %v1147_v41  ;;  %v1150_v17 = vmul.f32 0.70710677, %v882_v27  ;;  %v691_v61 = vadd.f32 %v4290_v37, %v3849_v2  ;;  %v3289_v45 = vpop.eup %3288  ;;  %v884_v15 = vadd.f32 %v4292_v48, %v3851_v59 }
 0x187   : > { %3302 = verf.f32 %v1148_v20  ;;  %v1609_v10 = vpack.c.bf16 %v4542_v53, %v4498_v54  ;;  %v1611_v23 = vpack.c.bf16 %v4551_v25, %v4507_v9  ;;  %v4622_v30 = vmul.f32 %v1393_v49, %v4525_v3  ;;  %v5245_v54 = vld [vmem:[#allocation3_spill] sm:$0xff]  ;;  %v5246_v3 = vld [vmem:[#allocation4_spill] sm:$0xff] }
 0x188   : > { %v3291_v13 = vpop.eup %3290  ;;  %v4624_v46 = vmul.f32 0.5, %v878_v8  ;;  %v4626_v21 = vmul.f32 0.5, %v689_v0  ;;  %v1149_v37 = vmul.f32 0.70710677, %v691_v61  ;;  %v4629_v20 = vmul.f32 %v1395_v33, %v4544_v56 }
 0x189   : > { %v3293_v36 = vpop.eup %3292  ;;  %v1396_v48 = vadd.f32 1.0, %v3287_v40  ;;  %v1151_v16 = vmul.f32 0.70710677, %v884_v15  ;;  %1995 = vmatprep.mubr.bf16.mxu0 %v1609_v10  ;;  %2156 = vmatprep.mubr.bf16.mxu1 %v1611_v23  ;;  %v693_v9 = vadd.f32 %v5245_v54, %v3845_v57  ;;  %v4633_v53 = vmul.f32 0.5, %v882_v27  ;;  %v5247_v23 = vld [vmem:[#allocation5_spill] sm:$0xff] }
 0x18a   : > { %3304 = verf.f32 %v1150_v17  ;;  %v886_v25 = vadd.f32 %v5246_v3, %v3847_v58  ;;  %v1608_v8 = vpack.c.bf16 %v4516_v47, %v4476_v28  ;;  %v1398_v49 = vadd.f32 1.0, %v3289_v45  ;;  %v5248_v28 = vld [vmem:[#allocation6_spill] sm:$0xff] }
 0x18b   : > { %v3295_v0 = vpop.eup %3294  ;;  %v1397_v56 = vadd.f32 1.0, %v3291_v13  ;;  %3306 = verf.f32 %v1149_v37  ;;  %v1152_v41 = vmul.f32 0.70710677, %v693_v9  ;;  %v1399_v40 = vadd.f32 1.0, %v3293_v36 }
 0x18c   : > { %v3297_v33 = vpop.eup %3296  ;;  %3308 = verf.f32 %v1151_v16  ;;  %v1154_v10 = vmul.f32 0.70710677, %v886_v25  ;;  %1996 = vmatmul.mubr.bf16.gmra.mrb[92].mxu0 %v1608_v8  ;;  %v1610_v27 = vpack.c.bf16 %v4519_v7, %v4491_v44  ;;  %v1400_v17 = vadd.f32 1.0, %v3295_v0 }
 0x18d   : > { %3310 = verf.f32 %v1152_v41  ;;  %v695_v54 = vadd.f32 %v5247_v23, %v3849_v2  ;;  %v888_v47 = vadd.f32 %v5248_v28, %v3851_v59  ;;  %v4646_v45 = vmul.f32 %v1396_v48, %v4546_v42 }
 0x18e   : > { %v1402_v13 = vadd.f32 1.0, %v3297_v33  ;;  %3312 = verf.f32 %v1154_v10  ;;  %2157 = vmatmul.mubr.bf16.gmra.mrb[92].mxu1 %v1610_v27  ;;  %v699_v37 = vadd.f32 %v4338_v39, %v3845_v57  ;;  %v3299_v36 = vpop.eup %3298  ;;  %v4651_v44 = vmul.f32 %v1398_v49, %v4560_v34 }
 0x18f   : > { %v4653_v7 = vmul.f32 0.5, %v691_v61  ;;  %v1153_v16 = vmul.f32 0.70710677, %v695_v54  ;;  %v892_v3 = vadd.f32 %v4340_v29, %v3847_v58  ;;  %v4658_v42 = vmul.f32 %v1397_v56, %v4585_v51 }
 0x190   : > { %v3301_v8 = vpop.eup %3300  ;;  %v4661_v48 = vmul.f32 %v1399_v40, %v4599_v22  ;;  %v4663_v0 = vmul.f32 0.5, %v884_v15  ;;  %v1155_v39 = vmul.f32 0.70710677, %v888_v47  ;;  %v4666_v34 = vmul.f32 %v1400_v17, %v4601_v50 }
 0x191   : > { %v3303_v41 = vpop.eup %3302  ;;  %v4668_v61 = vmul.f32 0.5, %v693_v9  ;;  %v4670_v49 = vmul.f32 0.5, %v886_v25  ;;  %v1156_v33 = vmul.f32 0.70710677, %v699_v37  ;;  %v4673_v29 = vmul.f32 %v1402_v13, %v4603_v63  ;;  %v5249_v9 = vld [vmem:[#allocation18_spill] sm:$0xff] }
 0x192   : > { %v1401_v51 = vadd.f32 1.0, %v3299_v36  ;;  %v4675_v56 = vmul.f32 0.5, %v695_v54  ;;  %3314 = verf.f32 %v1153_v16  ;;  %v1403_v22 = vadd.f32 1.0, %v3301_v8 }
 0x193   : > { %3316 = verf.f32 %v1155_v39  ;;  %v1158_v15 = vmul.f32 0.70710677, %v892_v3  ;;  %v701_v40 = vadd.f32 %v4347_v18, %v3849_v2  ;;  %v1404_v10 = vadd.f32 1.0, %v3303_v41 }
 0x194   : > { %v3305_v50 = vpop.eup %3304  ;;  %v894_v25 = vadd.f32 %v5249_v9, %v3851_v59  ;;  %v1613_v27 = vpack.c.bf16 %v4622_v30, %v4594_v52  ;;  %v1615_v63 = vpack.c.bf16 %v4629_v20, %v4597_v4  ;;  %v4685_v23 = vmul.f32 0.5, %v888_v47  ;;  %v5250_v52 = vld [vmem:[#allocation19_spill] sm:$0xff]  ;;  %v5251_v47 = vld [vmem:[#allocation20_spill] sm:$0xff] }
 0x195   : > { %v3307_v17 = vpop.eup %3306  ;;  %v4687_v54 = vmul.f32 0.5, %v699_v37  ;;  %3318 = verf.f32 %v1156_v33  ;;  %v1157_v28 = vmul.f32 0.70710677, %v701_v40  ;;  %v4690_v18 = vmul.f32 %v1401_v51, %v4611_v55 }
 0x196   : > { %v3309_v13 = vpop.eup %3308  ;;  %3320 = verf.f32 %v1158_v15  ;;  %v1159_v36 = vmul.f32 0.70710677, %v894_v25  ;;  %2003 = vmatprep.mubr.bf16.mxu0 %v1613_v27  ;;  %2164 = vmatprep.mubr.bf16.mxu1 %v1615_v63  ;;  %v703_v30 = vadd.f32 %v5250_v52, %v3845_v57  ;;  %v1531_v4 = vmul.f32 %v1403_v22, %v4624_v46 }
 0x197   : > { %v3311_v16 = vpop.eup %3310  ;;  %v1406_v20 = vadd.f32 1.0, %v3305_v50  ;;  %v896_v37 = vadd.f32 %v5251_v47, %v3847_v58  ;;  %v1612_v8 = vpack.c.bf16 %v4606_v14, %v4558_v1  ;;  %v4700_v55 = vmul.f32 %v1404_v10, %v4626_v21  ;;  %v5252_v50 = vld [vmem:[#allocation21_spill] sm:$0xff]  ;;  %v5253_v14 = vld [vmem:[#allocation22_spill] sm:$0xff] }
 0x198   : > { %v3313_v39 = vpop.eup %3312  ;;  %v1405_v41 = vadd.f32 1.0, %v3307_v17  ;;  %v4702_v33 = vmul.f32 0.5, %v892_v3  ;;  %3322 = verf.f32 %v1157_v28  ;;  %v1407_v51 = vadd.f32 1.0, %v3309_v13 }
 0x199   : > { %3324 = verf.f32 %v1159_v36  ;;  %v1160_v15 = vmul.f32 0.70710677, %v703_v30  ;;  %v1162_v9 = vmul.f32 0.70710677, %v896_v37  ;;  %2004 = vmatmul.mubr.bf16.gmra.mrb[96].mxu0 %v1612_v8  ;;  %v1408_v46 = vadd.f32 1.0, %v3311_v16 }
 0x19a   : > { %v1614_v22 = vpack.c.bf16 %v4609_v12, %v4567_v6  ;;  %v705_v1 = vadd.f32 %v5252_v50, %v3849_v2  ;;  %v898_v21 = vadd.f32 %v5253_v14, %v3851_v59  ;;  %v1410_v10 = vadd.f32 1.0, %v3313_v39 }
 0x19b   : > { %3326 = verf.f32 %v1160_v15  ;;  %v709_v3 = vadd.f32 %v4390_v35, %v3845_v57  ;;  %v902_v27 = vadd.f32 %v4392_v24, %v3847_v58  ;;  %v4715_v17 = vmul.f32 %v1406_v20, %v4633_v53 }
 0x19c   : > { %v3315_v63 = vpop.eup %3314  ;;  %v4717_v28 = vmul.f32 0.5, %v701_v40  ;;  %3328 = verf.f32 %v1162_v9  ;;  %2165 = vmatmul.mubr.bf16.gmra.mrb[96].mxu1 %v1614_v22  ;;  %v1161_v6 = vmul.f32 0.70710677, %v705_v1  ;;  %v4720_v13 = vmul.f32 %v1405_v41, %v4653_v7 }
 0x19d   : > { %v3317_v12 = vpop.eup %3316  ;;  %v4723_v36 = vmul.f32 %v1407_v51, %v4663_v0  ;;  %v4725_v35 = vmul.f32 0.5, %v894_v25  ;;  %v1163_v52 = vmul.f32 0.70710677, %v898_v21  ;;  %v4727_v24 = vmul.f32 0.5, %v703_v30 }
 0x19e   : > { %v4729_v16 = vmul.f32 0.5, %v896_v37  ;;  %3330 = verf.f32 %v1161_v6  ;;  %v1164_v53 = vmul.f32 0.70710677, %v709_v3  ;;  %v4732_v20 = vmul.f32 %v1408_v46, %v4668_v61 }
 0x19f   : > { %v3319_v40 = vpop.eup %3318  ;;  %v4735_v47 = vmul.f32 %v1410_v10, %v4670_v49  ;;  %3332 = verf.f32 %v1163_v52  ;;  %v1166_v7 = vmul.f32 0.70710677, %v902_v27  ;;  %v1409_v8 = vadd.f32 1.0, %v3315_v63 }
 0x1a0   : > { %v3321_v0 = vpop.eup %3320  ;;  %v1411_v25 = vadd.f32 1.0, %v3317_v12  ;;  %3334 = verf.f32 %v1164_v53  ;;  %v711_v30 = vadd.f32 %v4398_v38, %v3849_v2  ;;  %v4739_v37 = vmul.f32 0.5, %v705_v1 }
 0x1a1   : > { %v904_v39 = vadd.f32 %v4400_v19, %v3851_v59  ;;  %v1617_v61 = vpack.c.bf16 %v4690_v18, %v4658_v42  ;;  %v1619_v49 = vpack.c.bf16 %v1531_v4, %v4661_v48  ;;  %v1412_v51 = vadd.f32 1.0, %v3319_v40  ;;  %v5254_v18 = vld [vmem:[#allocation7_spill] sm:$0xff] }
 0x1a2   : > { %v3323_v41 = vpop.eup %3322  ;;  %v4746_v15 = vmul.f32 0.5, %v898_v21  ;;  %v4748_v9 = vmul.f32 0.5, %v709_v3  ;;  %v1165_v46 = vmul.f32 0.70710677, %v711_v30  ;;  %v1414_v50 = vadd.f32 1.0, %v3321_v0  ;;  %v5257_v0 = vld [vmem:[#allocation8_spill] sm:$0xff] }
 0x1a3   : > { %v3325_v22 = vpop.eup %3324  ;;  %3336 = verf.f32 %v1166_v7  ;;  %v1167_v38 = vmul.f32 0.70710677, %v904_v39  ;;  %2011 = vmatprep.mubr.bf16.mxu0 %v1617_v61  ;;  %2172 = vmatprep.mubr.bf16.mxu1 %v1619_v49  ;;  %v713_v19 = vadd.f32 %v4409_v62, %v3845_v57  ;;  %v1537_v42 = vmul.f32 %v1409_v8, %v4675_v56 }
 0x1a4   : > { %v1539_v48 = vmul.f32 %v1411_v25, %v4685_v23  ;;  %v906_v4 = vadd.f32 %v5254_v18, %v3847_v58  ;;  %v1616_v1 = vpack.c.bf16 %v4666_v34, %v4646_v45  ;;  %v1413_v21 = vadd.f32 1.0, %v3323_v41  ;;  %v5255_v45 = vld [vmem:[#allocation23_spill] sm:$0xff] }
 0x1a5   : > { %v3327_v14 = vpop.eup %3326  ;;  %v4758_v10 = vmul.f32 0.5, %v902_v27  ;;  %3338 = verf.f32 %v1165_v46  ;;  %v1168_v3 = vmul.f32 0.70710677, %v713_v19  ;;  %v1415_v6 = vadd.f32 1.0, %v3325_v22  ;;  %v5256_v27 = vld [vmem:[#allocation24_spill] sm:$0xff] }
 0x1a6   : > { %v3329_v63 = vpop.eup %3328  ;;  %3340 = verf.f32 %v1167_v38  ;;  %v1170_v62 = vmul.f32 0.70710677, %v906_v4  ;;  %2012 = vmatmul.mubr.bf16.gmra.mrb[100].mxu0 %v1616_v1  ;;  %v1618_v56 = vpack.c.bf16 %v4673_v29, %v4651_v44  ;;  %v4763_v23 = vmul.f32 %v1412_v51, %v4687_v54 }
 0x1a7   : > { %v4766_v12 = vmul.f32 %v1414_v50, %v4702_v33  ;;  %v715_v34 = vadd.f32 %v5255_v45, %v3849_v2  ;;  %v908_v52 = vadd.f32 %v5256_v27, %v3851_v59  ;;  %v1416_v40 = vadd.f32 1.0, %v3327_v14  ;;  %v5258_v14 = vld [vmem:[#allocation25_spill] sm:$0xff] }
 0x1a8   : > { %v3331_v53 = vpop.eup %3330  ;;  %v1418_v7 = vadd.f32 1.0, %v3329_v63  ;;  %3342 = verf.f32 %v1168_v3  ;;  %2173 = vmatmul.mubr.bf16.gmra.mrb[100].mxu1 %v1618_v56  ;;  %v719_v44 = vadd.f32 %v4449_v32, %v3845_v57  ;;  %v4774_v54 = vmul.f32 0.5, %v711_v30 }
 0x1a9   : > { %v3333_v29 = vpop.eup %3332  ;;  %3344 = verf.f32 %v1170_v62  ;;  %v1169_v33 = vmul.f32 0.70710677, %v715_v34  ;;  %v912_v8 = vadd.f32 %v5257_v0, %v3847_v58  ;;  %v4779_v61 = vmul.f32 %v1413_v21, %v4717_v28 }
 0x1aa   : > { %v3335_v25 = vpop.eup %3334  ;;  %v4782_v49 = vmul.f32 %v1415_v6, %v4725_v35  ;;  %v1039_v41 = vmul.f32 0.5, %v904_v39  ;;  %v1171_v51 = vmul.f32 0.70710677, %v908_v52  ;;  %v1417_v46 = vadd.f32 1.0, %v3331_v53 }
 0x1ab   : > { %v4784_v22 = vmul.f32 0.5, %v713_v19  ;;  %v4786_v32 = vmul.f32 0.5, %v906_v4  ;;  %3346 = verf.f32 %v1169_v33  ;;  %v4789_v30 = vmul.f32 %v1416_v40, %v4727_v24  ;;  %v5259_v4 = vld [vmem:[#allocation26_spill] sm:$0xff] }
 0x1ac   : > { %v4792_v50 = vmul.f32 %v1418_v7, %v4729_v16  ;;  %v4794_v38 = vmul.f32 0.5, %v715_v34  ;;  %v1172_v28 = vmul.f32 0.70710677, %v719_v44  ;;  %v1419_v35 = vadd.f32 1.0, %v3333_v29 }
 0x1ad   : > { %v3337_v18 = vpop.eup %3336  ;;  %v1420_v1 = vadd.f32 1.0, %v3335_v25  ;;  %v1174_v39 = vmul.f32 0.70710677, %v912_v8  ;;  %v721_v19 = vadd.f32 %v5258_v14, %v3849_v2  ;;  %3348 = verf.f32 %v1171_v51  ;;  %v5262_v51 = vld [vmem:[#allocation10_spill] sm:$0xff] }
 0x1ae   : > { %v914_v21 = vadd.f32 %v5259_v4, %v3851_v59  ;;  %v1621_v24 = vpack.c.bf16 %v1537_v42, %v4720_v13  ;;  %v1623_v3 = vpack.c.bf16 %v1539_v48, %v4723_v36  ;;  %v4803_v63 = vmul.f32 %v1417_v46, %v4739_v37  ;;  %v5260_v37 = vld [vmem:[#allocation9_spill] sm:$0xff] }
 0x1af   : > { %v3339_v16 = vpop.eup %3338  ;;  %v4805_v6 = vmul.f32 0.5, %v908_v52  ;;  %v4807_v62 = vmul.f32 0.5, %v719_v44  ;;  %v1173_v56 = vmul.f32 0.70710677, %v721_v19  ;;  %v1422_v34 = vadd.f32 1.0, %v3337_v18 }
 0x1b0   : > { %v3341_v45 = vpop.eup %3340  ;;  %3350 = verf.f32 %v1172_v28  ;;  %v1175_v27 = vmul.f32 0.70710677, %v914_v21  ;;  %2019 = vmatprep.mubr.bf16.mxu0 %v1621_v24  ;;  %2180 = vmatprep.mubr.bf16.mxu1 %v1623_v3  ;;  %v723_v13 = vadd.f32 %v4471_v60, %v3845_v57  ;;  %v1547_v36 = vmul.f32 %v1419_v35, %v4746_v15  ;;  %v5263_v28 = vld [vmem:[#allocation11_spill] sm:$0xff] }
 0x1b1   : > { %3352 = verf.f32 %v1174_v39  ;;  %v916_v42 = vadd.f32 %v5260_v37, %v3847_v58  ;;  %v1620_v48 = vpack.c.bf16 %v4732_v20, %v4700_v55  ;;  %v4817_v53 = vmul.f32 %v1420_v1, %v4748_v9  ;;  %v5261_v20 = vld [vmem:[#allocation27_spill] sm:$0xff]  ;;  %v5265_v37 = vld [vmem:[#allocation29_spill] sm:$0xff] }
 0x1b2   : > { %v3343_v52 = vpop.eup %3342  ;;  %v1421_v40 = vadd.f32 1.0, %v3339_v16  ;;  %v4819_v7 = vmul.f32 0.5, %v912_v8  ;;  %3354 = verf.f32 %v1173_v56  ;;  %v1423_v29 = vadd.f32 1.0, %v3341_v45  ;;  %v5264_v45 = vld [vmem:[#allocation28_spill] sm:$0xff] }
 0x1b3   : > { %v3345_v44 = vpop.eup %3344  ;;  %3356 = verf.f32 %v1175_v27  ;;  %v1176_v60 = vmul.f32 0.70710677, %v723_v13  ;;  %v1178_v15 = vmul.f32 0.70710677, %v916_v42  ;;  %2020 = vmatmul.mubr.bf16.gmra.mrb[104].mxu0 %v1620_v48  ;;  %v4822_v33 = vmul.f32 %v1422_v34, %v4758_v10 }
 0x1b4   : > { %v1622_v55 = vpack.c.bf16 %v4735_v47, %v4715_v17  ;;  %v725_v9 = vadd.f32 %v5261_v20, %v3849_v2  ;;  %v918_v0 = vadd.f32 %v4480_v5, %v3851_v59  ;;  %v1424_v25 = vadd.f32 1.0, %v3343_v52  ;;  %v5266_v20 = vld [vmem:[#allocation30_spill] sm:$0xff] }
 0x1b5   : > { %v3347_v8 = vpop.eup %3346  ;;  %3358 = verf.f32 %v1176_v60  ;;  %v729_v46 = vadd.f32 %v5262_v51, %v3845_v57  ;;  %v922_v18 = vadd.f32 %v5263_v28, %v3847_v58  ;;  %v1426_v10 = vadd.f32 1.0, %v3345_v44 }
 0x1b6   : > { %v4834_v35 = vmul.f32 0.5, %v721_v19  ;;  %3360 = verf.f32 %v1178_v15  ;;  %2181 = vmatmul.mubr.bf16.gmra.mrb[104].mxu1 %v1622_v55  ;;  %v1177_v17 = vmul.f32 0.70710677, %v725_v9  ;;  %v4837_v47 = vmul.f32 %v1421_v40, %v4774_v54 }
 0x1b7   : > { %v4839_v1 = vmul.f32 %v1423_v29, %v1039_v41  ;;  %v4841_v5 = vmul.f32 0.5, %v914_v21  ;;  %v1179_v39 = vmul.f32 0.70710677, %v918_v0  ;;  %v3349_v14 = vpop.eup %3348  ;;  %v1425_v4 = vadd.f32 1.0, %v3347_v8 }
 0x1b8   : > { %v4843_v24 = vmul.f32 0.5, %v723_v13  ;;  %3362 = verf.f32 %v1177_v17  ;;  %v1180_v3 = vmul.f32 0.70710677, %v729_v46  ;;  %v4846_v19 = vmul.f32 %v1424_v25, %v4784_v22 }
 0x1b9   : > { %v4848_v16 = vmul.f32 0.5, %v916_v42  ;;  %3364 = verf.f32 %v1179_v39  ;;  %v1182_v56 = vmul.f32 0.70710677, %v922_v18  ;;  %v4851_v41 = vmul.f32 %v1426_v10, %v4786_v32 }
 0x1ba   : > { %v3351_v54 = vpop.eup %3350  ;;  %v4853_v21 = vmul.f32 0.5, %v725_v9  ;;  %3366 = verf.f32 %v1180_v3  ;;  %v731_v34 = vadd.f32 %v5264_v45, %v3849_v2  ;;  %v1427_v13 = vadd.f32 1.0, %v3349_v14 }
 0x1bb   : > { %v3353_v27 = vpop.eup %3352  ;;  %v924_v22 = vadd.f32 %v5265_v37, %v3851_v59  ;;  %v1625_v42 = vpack.c.bf16 %v4803_v63, %v4779_v61  ;;  %v1627_v48 = vpack.c.bf16 %v1547_v36, %v4782_v49  ;;  %v4863_v32 = vmul.f32 %v1425_v4, %v4794_v38  ;;  %v5267_v49 = vld [vmem:[#allocation12_spill] sm:$0xff] }
 0x1bc   : > { %v3355_v52 = vpop.eup %3354  ;;  %v4865_v40 = vmul.f32 0.5, %v918_v0  ;;  %v4867_v44 = vmul.f32 0.5, %v729_v46  ;;  %v1181_v29 = vmul.f32 0.70710677, %v731_v34  ;;  %v1428_v15 = vadd.f32 1.0, %v3351_v54  ;;  %v5269_v54 = vld [vmem:[#allocation13_spill] sm:$0xff] }
 0x1bd   : > { %v3357_v60 = vpop.eup %3356  ;;  %3368 = verf.f32 %v1182_v56  ;;  %v1183_v55 = vmul.f32 0.70710677, %v924_v22  ;;  %2027 = vmatprep.mubr.bf16.mxu0 %v1625_v42  ;;  %2188 = vmatprep.mubr.bf16.mxu1 %v1627_v48  ;;  %v733_v61 = vadd.f32 %v5266_v20, %v3845_v57  ;;  %v1430_v63 = vadd.f32 1.0, %v3353_v27 }
 0x1be   : > { %3370 = verf.f32 %v1181_v29  ;;  %v926_v38 = vadd.f32 %v5267_v49, %v3847_v58  ;;  %v1624_v36 = vpack.c.bf16 %v4789_v30, %v4763_v23  ;;  %v1555_v0 = vmul.f32 %v1427_v13, %v4805_v6  ;;  %v5268_v23 = vld [vmem:[#allocation31_spill] sm:$0xff] }
 0x1bf   : > { %v3359_v9 = vpop.eup %3358  ;;  %v4876_v8 = vmul.f32 0.5, %v922_v18  ;;  %3372 = verf.f32 %v1183_v55  ;;  %v1184_v25 = vmul.f32 0.70710677, %v733_v61  ;;  %v1429_v46 = vadd.f32 1.0, %v3355_v52 }
 0x1c0   : > { %v3361_v51 = vpop.eup %3360  ;;  %v1431_v28 = vadd.f32 1.0, %v3357_v60  ;;  %v1186_v10 = vmul.f32 0.70710677, %v926_v38  ;;  %2028 = vmatmul.mubr.bf16.gmra.mrb[108].mxu0 %v1624_v36  ;;  %v1626_v17 = vpack.c.bf16 %v4792_v50, %v4766_v12  ;;  %v4881_v39 = vmul.f32 %v1428_v15, %v4807_v62 }
 0x1c1   : > { %3374 = verf.f32 %v1184_v25  ;;  %v735_v30 = vadd.f32 %v5268_v23, %v3849_v2  ;;  %v928_v6 = vadd.f32 %v4539_v31, %v3851_v59  ;;  %v4888_v14 = vmul.f32 %v1430_v63, %v4819_v7 }
 0x1c2   : > { %v3363_v18 = vpop.eup %3362  ;;  %v1432_v4 = vadd.f32 1.0, %v3359_v9  ;;  %3376 = verf.f32 %v1186_v10  ;;  %2189 = vmatmul.mubr.bf16.gmra.mrb[108].mxu1 %v1626_v17  ;;  %v4892_v12 = vadd.f32 %v4562_v26, %v3845_v57  ;;  %v1434_v62 = vadd.f32 1.0, %v3361_v51 }
 0x1c3   : > { %v3365_v50 = vpop.eup %3364  ;;  %v4894_v3 = vmul.f32 0.5, %v731_v34  ;;  %v1185_v56 = vmul.f32 0.70710677, %v735_v30  ;;  %v4898_v45 = vadd.f32 %v5269_v54, %v3847_v58  ;;  %v4901_v7 = vmul.f32 %v1429_v46, %v4834_v35  ;;  %v5271_v46 = vld [vmem:[#allocation15_spill] sm:$0xff] }
 0x1c4   : > { %v3367_v31 = vpop.eup %3366  ;;  %v4904_v27 = vmul.f32 %v1431_v28, %v4841_v5  ;;  %v4906_v13 = vmul.f32 0.5, %v924_v22  ;;  %v1187_v26 = vmul.f32 0.70710677, %v928_v6  ;;  %v1433_v37 = vadd.f32 1.0, %v3363_v18 }
 0x1c5   : > { %v1435_v42 = vadd.f32 1.0, %v3365_v50  ;;  %v1056_v48 = vmul.f32 0.5, %v733_v61  ;;  %3378 = verf.f32 %v1185_v56  ;;  %v4909_v34 = vmul.f32 %v1432_v4, %v4843_v24  ;;  %v5270_v24 = vld [vmem:[#allocation14_spill] sm:$0xff]  ;;  %v5273_v4 = vld [vmem:[#allocation17_spill] sm:$0xff] }
 0x1c6   : > { %v1058_v52 = vmul.f32 0.5, %v926_v38  ;;  %3380 = verf.f32 %v1187_v26  ;;  %v1188_v29 = vmul.f32 0.70710677, %v4892_v12  ;;  %v4913_v35 = vmul.f32 %v1434_v62, %v4848_v16 }
 0x1c7   : > { %v3369_v60 = vpop.eup %3368  ;;  %v1436_v5 = vadd.f32 1.0, %v3367_v31  ;;  %v1190_v22 = vmul.f32 0.70710677, %v4898_v45  ;;  %v4918_v15 = vadd.f32 %v4575_v11, %v3849_v2  ;;  %v1057_v20 = vmul.f32 0.5, %v735_v30 }
 0x1c8   : > { %v3371_v55 = vpop.eup %3370  ;;  %v4922_v61 = vadd.f32 %v5270_v24, %v3851_v59  ;;  %v1629_v63 = vpack.c.bf16 %v4863_v32, %v4837_v47  ;;  %v1631_v49 = vpack.c.bf16 %v1555_v0, %v4839_v1  ;;  %v1561_v38 = vmul.f32 %v1433_v37, %v4853_v21  ;;  %v5272_v21 = vld [vmem:[#allocation16_spill] sm:$0xff] }
 0x1c9   : > { %v3373_v16 = vpop.eup %3372  ;;  %v1563_v36 = vmul.f32 %v1435_v42, %v4865_v40  ;;  %v1059_v9 = vmul.f32 0.5, %v928_v6  ;;  %v1189_v11 = vmul.f32 0.70710677, %v4918_v15  ;;  %v1438_v25 = vadd.f32 1.0, %v3369_v60 }
 0x1ca   : > { %3382 = verf.f32 %v1188_v29  ;;  %v1191_v51 = vmul.f32 0.70710677, %v4922_v61  ;;  %2035 = vmatprep.mubr.bf16.mxu0 %v1629_v63  ;;  %2196 = vmatprep.mubr.bf16.mxu1 %v1631_v49  ;;  %v743_v28 = vadd.f32 %v5271_v46, %v3845_v57  ;;  %v4934_v1 = vmul.f32 %v1436_v5, %v4867_v44 }
 0x1cb   : > { %v3375_v47 = vpop.eup %3374  ;;  %3384 = verf.f32 %v1190_v22  ;;  %v936_v32 = vadd.f32 %v5272_v21, %v3847_v58  ;;  %v1628_v40 = vpack.c.bf16 %v4846_v19, %v4817_v53  ;;  %v1437_v10 = vadd.f32 1.0, %v3371_v55 }
 0x1cc   : > { %v3377_v0 = vpop.eup %3376  ;;  %v1439_v17 = vadd.f32 1.0, %v3373_v16  ;;  %v1440_v23 = vadd.f32 1.0, %v3375_v47  ;;  %3386 = verf.f32 %v1189_v11  ;;  %v1192_v6 = vmul.f32 0.70710677, %v743_v28 }
 0x1cd   : > { %v1442_v30 = vadd.f32 1.0, %v3377_v0  ;;  %3388 = verf.f32 %v1191_v51  ;;  %v1194_v57 = vmul.f32 0.70710677, %v936_v32  ;;  %2036 = vmatmul.mubr.bf16.gmra.mrb[112].mxu0 %v1628_v40  ;;  %v1630_v44 = vpack.c.bf16 %v4851_v41, %v4822_v33 }
 0x1ce   : > { %v1568_v18 = vmul.f32 %v1440_v23, %v1056_v48  ;;  %v745_v58 = vadd.f32 %v4589_v43, %v3849_v2  ;;  %v938_v53 = vadd.f32 %v5273_v4, %v3851_v59  ;;  %3390 = verf.f32 %v1192_v6 }
 0x1cf   : > { %v3379_v19 = vpop.eup %3378  ;;  %v4946_v50 = vmul.f32 %v1442_v30, %v1058_v52  ;;  %v1633_v62 = vpack.c.bf16 %v1561_v38, %v4901_v7  ;;  %v1635_v56 = vpack.c.bf16 %v1563_v36, %v4904_v27  ;;  %v1566_v31 = vmul.f32 %v1438_v25, %v4876_v8  ;;  %2197 = vmatmul.mubr.bf16.gmra.mrb[112].mxu1 %v1630_v44 }
 0x1d0   : > { %v3381_v54 = vpop.eup %3380  ;;  %v1441_v26 = vadd.f32 1.0, %v3379_v19  ;;  %3392 = verf.f32 %v1194_v57  ;;  %v1193_v33 = vmul.f32 0.70710677, %v745_v58  ;;  %v1565_v2 = vmul.f32 %v1437_v10, %v4894_v3 }
 0x1d1   : > { %v1443_v43 = vadd.f32 1.0, %v3381_v54  ;;  %v1195_v41 = vmul.f32 0.70710677, %v938_v53  ;;  %2043 = vmatprep.mubr.bf16.mxu0 %v1633_v62  ;;  %2204 = vmatprep.mubr.bf16.mxu1 %v1635_v56  ;;  %v1632_v59 = vpack.c.bf16 %v4909_v34, %v4881_v39  ;;  %v1567_v7 = vmul.f32 %v1439_v17, %v4906_v13 }
 0x1d2   : > { %v1569_v37 = vmul.f32 %v1441_v26, %v1057_v20  ;;  %3394 = verf.f32 %v1193_v33  ;;  %v1634_v8 = vpack.c.bf16 %v4913_v35, %v4888_v14  ;;  %v1636_v42 = vpack.c.bf16 %v1568_v18, %v4934_v1 }
 0x1d3   : > { %v1571_v27 = vmul.f32 %v1443_v43, %v1059_v9  ;;  %3396 = verf.f32 %v1195_v41  ;;  %v1638_v3 = vpack.c.bf16 %v4946_v50, %v1566_v31  ;;  %v1060_v35 = vmul.f32 0.5, %v4892_v12 }
 0x1d4   : > { %v3383_v48 = vpop.eup %3382  ;;  %v1637_v52 = vpack.c.bf16 %v1569_v37, %v1565_v2  ;;  %v1064_v55 = vmul.f32 0.5, %v743_v28  ;;  %v1062_v24 = vmul.f32 0.5, %v4898_v45  ;;  %v1066_v49 = vmul.f32 0.5, %v936_v32 }
 0x1d5   : > { %v3385_v29 = vpop.eup %3384  ;;  %2044 = vmatmul.mubr.bf16.gmra.mrb[116].mxu0 %v1632_v59  ;;  %v1639_v60 = vpack.c.bf16 %v1571_v27, %v1567_v7  ;;  %v1444_v13 = vadd.f32 1.0, %v3383_v48  ;;  %v1061_v9 = vmul.f32 0.5, %v4918_v15  ;;  %v1065_v1 = vmul.f32 0.5, %v745_v58 }
 0x1d6   : > { %v3387_v5 = vpop.eup %3386  ;;  %2051 = vmatprep.mubr.bf16.mxu0 %v1637_v52  ;;  %v1446_v22 = vadd.f32 1.0, %v3385_v29  ;;  %v1063_v12 = vmul.f32 0.5, %v4922_v61  ;;  %v1067_v28 = vmul.f32 0.5, %v938_v53  ;;  %v4967_v61 = vld [vmem:[%s5183_s4] ss:$0 sm:$0xff] }
 0x1d7   : > { %v3389_v39 = vpop.eup %3388  ;;  %2205 = vmatmul.mubr.bf16.gmra.mrb[116].mxu1 %v1634_v8  ;;  %v1445_v63 = vadd.f32 1.0, %v3387_v5  ;;  %v1572_v36 = vmul.f32 %v1444_v13, %v1060_v35 }
 0x1d8   : > { %v3391_v34 = vpop.eup %3390  ;;  %2212 = vmatprep.mubr.bf16.mxu1 %v1639_v60  ;;  %v1447_v11 = vadd.f32 1.0, %v3389_v39  ;;  %v1574_v46 = vmul.f32 %v1446_v22, %v1062_v24 }
 0x1d9   : > { %v1448_v20 = vadd.f32 1.0, %v3391_v34  ;;  %v1573_v32 = vmul.f32 %v1445_v63, %v1061_v9 }
 0x1da   : > { %v3393_v14 = vpop.eup %3392  ;;  %v1575_v17 = vmul.f32 %v1447_v11, %v1063_v12 }
 0x1db   : > { %v1450_v16 = vadd.f32 1.0, %v3393_v14  ;;  %v1576_v25 = vmul.f32 %v1448_v20, %v1064_v55 }
 0x1dc   : > { %v3395_v38 = vpop.eup %3394 }
 0x1dd   : > { %v3397_v51 = vpop.eup %3396  ;;  %v1578_v47 = vmul.f32 %v1450_v16, %v1066_v49  ;;  %v1449_v21 = vadd.f32 1.0, %v3395_v38  ;;  %2052 = vmatmul.mubr.bf16.gmra.mrb[120].mxu0 %v1636_v42  ;;  %v1640_v40 = vpack.c.bf16 %v1576_v25, %v1572_v36 }
 0x1de   : > { %v1451_v45 = vadd.f32 1.0, %v3397_v51 }
 0x1df   : > { %v1577_v0 = vmul.f32 %v1449_v21, %v1065_v1  ;;  %v1642_v10 = vpack.c.bf16 %v1578_v47, %v1574_v46  ;;  %2213 = vmatmul.mubr.bf16.gmra.mrb[120].mxu1 %v1638_v3 }
 0x1e0   : > { %v1579_v23 = vmul.f32 %v1451_v45, %v1067_v28 }
 0x1e1   : > { %v1641_v15 = vpack.c.bf16 %v1577_v0, %v1573_v32 }
 0x1e2   : > { %v1643_v30 = vpack.c.bf16 %v1579_v23, %v1575_v17 }
 0x1e3   : > { %2059 = vmatprep.mubr.bf16.mxu0 %v1641_v15 }
 0x1e4   : > { %2220 = vmatprep.mubr.bf16.mxu1 %v1643_v30 }
 0x1e5   : > { %2060 = vmatmul.mubr.bf16.gmra.mrb[124].mxu0 %v1640_v40 }
 0x1e7   : > { %2221 = vmatmul.mubr.bf16.gmra.mrb[124].mxu1 %v1642_v10 }
 0x200   : > { %v2749_v6 = vpop.f32.mrb[64].mxu0  ;;  %v2861_v57 = vpop.f32.mrb[64].mxu1 }
 0x201   : > { %v2750_v18 = vpop.f32.mrb[65].mxu0  ;;  %v2862_v44 = vpop.f32.mrb[65].mxu1 }
 0x202   : > { %v2751_v58 = vadd.f32 %v2750_v18, %v2749_v6  ;;  %v2863_v4 = vadd.f32 %v2862_v44, %v2861_v57  ;;  %v2752_v53 = vpop.f32.mrb[66].mxu0  ;;  %v2864_v19 = vpop.f32.mrb[66].mxu1 }
 0x203   : > { %v2753_v50 = vpop.f32.mrb[67].mxu0  ;;  %v2865_v62 = vpop.f32.mrb[67].mxu1 }
 0x204   : > { %v1942_v56 = vadd.f32 %v2751_v58, %v4967_v61  ;;  %v2754_v54 = vadd.f32 %v2753_v50, %v2752_v53  ;;  %v2866_v31 = vadd.f32 %v2865_v62, %v2864_v19 }
 0x206   : > { %v2103_v26 = vadd.f32 %v2863_v4, %v1942_v56  ;;  %v1945_v33 = vadd.f32 %v2754_v54, %v4967_v61 }
 0x208   : > { %2229 = vst [vmem:[%s4971_s18] sm:$0xff] %v2103_v26  ;;  %v2106_v2 = vadd.f32 %v2866_v31, %v1945_v33 }
 0x20a   : > { %2230 = vst [vmem:[%s4971_s18 + $0x8] sm:$0xff] %v2106_v2 }
 0x20f   : > { %v2755_v43 = vpop.f32.mrb[68].mxu0 }
 0x210   : > { %v2756_v59 = vpop.f32.mrb[69].mxu0 }
 0x211   : > { %v2867_v41 = vpop.f32.mrb[68].mxu1  ;;  %v2757_v37 = vadd.f32 %v2756_v59, %v2755_v43  ;;  %v2758_v27 = vpop.f32.mrb[70].mxu0 }
 0x212   : > { %v2868_v7 = vpop.f32.mrb[69].mxu1  ;;  %v2759_v3 = vpop.f32.mrb[71].mxu0 }
 0x213   : > { %v2869_v8 = vadd.f32 %v2868_v7, %v2867_v41  ;;  %v2870_v42 = vpop.f32.mrb[70].mxu1  ;;  %v1950_v52 = vadd.f32 %v2757_v37, %v4967_v61  ;;  %v2760_v29 = vadd.f32 %v2759_v3, %v2758_v27 }
 0x214   : > { %v2871_v48 = vpop.f32.mrb[71].mxu1 }
 0x215   : > { %v2872_v60 = vadd.f32 %v2871_v48, %v2870_v42  ;;  %v2111_v5 = vadd.f32 %v2869_v8, %v1950_v52  ;;  %v1953_v39 = vadd.f32 %v2760_v29, %v4967_v61 }
 0x217   : > { %2231 = vst [vmem:[%s4971_s18 + $0x10] sm:$0xff] %v2111_v5  ;;  %v2114_v13 = vadd.f32 %v2872_v60, %v1953_v39 }
 0x219   : > { %2232 = vst [vmem:[%s4971_s18 + $0x18] sm:$0xff] %v2114_v13 }
 0x21e   : > { %v2761_v34 = vpop.f32.mrb[72].mxu0  ;;  %v2873_v22 = vpop.f32.mrb[72].mxu1 }
 0x21f   : > { %v2762_v14 = vpop.f32.mrb[73].mxu0  ;;  %v2874_v35 = vpop.f32.mrb[73].mxu1 }
 0x220   : > { %v2763_v55 = vadd.f32 %v2762_v14, %v2761_v34  ;;  %v2875_v20 = vadd.f32 %v2874_v35, %v2873_v22  ;;  %v2764_v24 = vpop.f32.mrb[74].mxu0  ;;  %v2876_v63 = vpop.f32.mrb[74].mxu1 }
 0x221   : > { %v2765_v49 = vpop.f32.mrb[75].mxu0  ;;  %v2877_v16 = vpop.f32.mrb[75].mxu1 }
 0x222   : > { %v1958_v38 = vadd.f32 %v2763_v55, %v4967_v61  ;;  %v2766_v36 = vadd.f32 %v2765_v49, %v2764_v24  ;;  %v2878_v9 = vadd.f32 %v2877_v16, %v2876_v63 }
 0x224   : > { %v2119_v11 = vadd.f32 %v2875_v20, %v1958_v38  ;;  %v1961_v25 = vadd.f32 %v2766_v36, %v4967_v61 }
 0x226   : > { %2233 = vst [vmem:[%s4971_s18 + $0x20] sm:$0xff] %v2119_v11  ;;  %v2122_v51 = vadd.f32 %v2878_v9, %v1961_v25 }
 0x228   : > { %2234 = vst [vmem:[%s4971_s18 + $0x28] sm:$0xff] %v2122_v51 }
 0x229   : > { %v2767_v46 = vpop.f32.mrb[76].mxu0  ;;  %v2879_v47 = vpop.f32.mrb[76].mxu1 }
 0x22a   : > { %v2768_v1 = vpop.f32.mrb[77].mxu0  ;;  %v2880_v12 = vpop.f32.mrb[77].mxu1 }
 0x22b   : > { %v2769_v21 = vadd.f32 %v2768_v1, %v2767_v46  ;;  %v2770_v28 = vpop.f32.mrb[78].mxu0  ;;  %v2881_v45 = vadd.f32 %v2880_v12, %v2879_v47  ;;  %v2882_v40 = vpop.f32.mrb[78].mxu1 }
 0x22c   : > { %v2771_v32 = vpop.f32.mrb[79].mxu0  ;;  %v2883_v17 = vpop.f32.mrb[79].mxu1 }
 0x22d   : > { %v1966_v0 = vadd.f32 %v2769_v21, %v4967_v61  ;;  %v2772_v10 = vadd.f32 %v2771_v32, %v2770_v28  ;;  %v2884_v23 = vadd.f32 %v2883_v17, %v2882_v40 }
 0x22f   : > { %v2127_v15 = vadd.f32 %v2881_v45, %v1966_v0  ;;  %v1969_v30 = vadd.f32 %v2772_v10, %v4967_v61 }
 0x231   : > { %2235 = vst [vmem:[%s4971_s18 + $0x30] sm:$0xff] %v2127_v15  ;;  %v2130_v6 = vadd.f32 %v2884_v23, %v1969_v30 }
 0x233   : > { %2236 = vst [vmem:[%s4971_s18 + $0x38] sm:$0xff] %v2130_v6 }
 0x237   : > { %v2773_v57 = vpop.f32.mrb[80].mxu0 }
 0x238   : > { %v2774_v18 = vpop.f32.mrb[81].mxu0 }
 0x239   : > { %v2775_v44 = vadd.f32 %v2774_v18, %v2773_v57  ;;  %v2776_v58 = vpop.f32.mrb[82].mxu0 }
 0x23a   : > { %v2885_v4 = vpop.f32.mrb[80].mxu1  ;;  %v2777_v53 = vpop.f32.mrb[83].mxu0 }
 0x23b   : > { %v1974_v19 = vadd.f32 %v2775_v44, %v4967_v61  ;;  %v2886_v50 = vpop.f32.mrb[81].mxu1  ;;  %v2778_v62 = vadd.f32 %v2777_v53, %v2776_v58 }
 0x23c   : > { %v2887_v56 = vadd.f32 %v2886_v50, %v2885_v4  ;;  %v2888_v54 = vpop.f32.mrb[82].mxu1 }
 0x23d   : > { %v1977_v31 = vadd.f32 %v2778_v62, %v4967_v61  ;;  %v2889_v26 = vpop.f32.mrb[83].mxu1 }
 0x23e   : > { %v2135_v33 = vadd.f32 %v2887_v56, %v1974_v19  ;;  %v2890_v2 = vadd.f32 %v2889_v26, %v2888_v54 }
 0x240   : > { %2237 = vst [vmem:[%s4971_s18 + $0x40] sm:$0xff] %v2135_v33  ;;  %v2138_v43 = vadd.f32 %v2890_v2, %v1977_v31 }
 0x242   : > { %2238 = vst [vmem:[%s4971_s18 + $0x48] sm:$0xff] %v2138_v43 }
 0x245   : > { %v2779_v41 = vpop.f32.mrb[84].mxu0 }
 0x246   : > { %v2780_v59 = vpop.f32.mrb[85].mxu0  ;;  %v2891_v8 = vpop.f32.mrb[84].mxu1 }
 0x247   : > { %v2781_v7 = vadd.f32 %v2780_v59, %v2779_v41  ;;  %v2782_v37 = vpop.f32.mrb[86].mxu0  ;;  %v2892_v3 = vpop.f32.mrb[85].mxu1 }
 0x248   : > { %v2783_v27 = vpop.f32.mrb[87].mxu0  ;;  %v2893_v52 = vadd.f32 %v2892_v3, %v2891_v8  ;;  %v2894_v29 = vpop.f32.mrb[86].mxu1 }
 0x249   : > { %v1982_v42 = vadd.f32 %v2781_v7, %v4967_v61  ;;  %v2784_v48 = vadd.f32 %v2783_v27, %v2782_v37  ;;  %v2895_v5 = vpop.f32.mrb[87].mxu1 }
 0x24a   : > { %v2896_v13 = vadd.f32 %v2895_v5, %v2894_v29 }
 0x24b   : > { %v1985_v60 = vadd.f32 %v2784_v48, %v4967_v61  ;;  %v2143_v39 = vadd.f32 %v2893_v52, %v1982_v42 }
 0x24d   : > { %2239 = vst [vmem:[%s4971_s18 + $0x50] sm:$0xff] %v2143_v39  ;;  %v2146_v34 = vadd.f32 %v2896_v13, %v1985_v60 }
 0x24f   : > { %2240 = vst [vmem:[%s4971_s18 + $0x58] sm:$0xff] %v2146_v34 }
 0x252   : > { %v2785_v22 = vpop.f32.mrb[88].mxu0 }
 0x253   : > { %v2786_v14 = vpop.f32.mrb[89].mxu0 }
 0x254   : > { %v2787_v35 = vadd.f32 %v2786_v14, %v2785_v22  ;;  %v2788_v55 = vpop.f32.mrb[90].mxu0 }
 0x255   : > { %v2897_v20 = vpop.f32.mrb[88].mxu1  ;;  %v2789_v24 = vpop.f32.mrb[91].mxu0 }
 0x256   : > { %v1990_v63 = vadd.f32 %v2787_v35, %v4967_v61  ;;  %v2898_v49 = vpop.f32.mrb[89].mxu1  ;;  %v2790_v16 = vadd.f32 %v2789_v24, %v2788_v55 }
 0x257   : > { %v2899_v38 = vadd.f32 %v2898_v49, %v2897_v20  ;;  %v2900_v36 = vpop.f32.mrb[90].mxu1 }
 0x258   : > { %v1993_v9 = vadd.f32 %v2790_v16, %v4967_v61  ;;  %v2901_v11 = vpop.f32.mrb[91].mxu1 }
 0x259   : > { %v2151_v25 = vadd.f32 %v2899_v38, %v1990_v63  ;;  %v2902_v51 = vadd.f32 %v2901_v11, %v2900_v36 }
 0x25b   : > { %2241 = vst [vmem:[%s4971_s18 + $0x60] sm:$0xff] %v2151_v25  ;;  %v2154_v46 = vadd.f32 %v2902_v51, %v1993_v9 }
 0x25d   : > { %2242 = vst [vmem:[%s4971_s18 + $0x68] sm:$0xff] %v2154_v46 }
 0x25f   : > { %v2791_v47 = vpop.f32.mrb[92].mxu0 }
 0x260   : > { %v2792_v1 = vpop.f32.mrb[93].mxu0 }
 0x261   : > { %v2903_v21 = vpop.f32.mrb[92].mxu1  ;;  %v2793_v12 = vadd.f32 %v2792_v1, %v2791_v47  ;;  %v2794_v28 = vpop.f32.mrb[94].mxu0 }
 0x262   : > { %v2904_v45 = vpop.f32.mrb[93].mxu1  ;;  %v2795_v40 = vpop.f32.mrb[95].mxu0 }
 0x263   : > { %v1998_v32 = vadd.f32 %v2793_v12, %v4967_v61  ;;  %v2905_v0 = vadd.f32 %v2904_v45, %v2903_v21  ;;  %v2906_v10 = vpop.f32.mrb[94].mxu1  ;;  %v2796_v17 = vadd.f32 %v2795_v40, %v2794_v28 }
 0x264   : > { %v2907_v23 = vpop.f32.mrb[95].mxu1 }
 0x265   : > { %v2159_v15 = vadd.f32 %v2905_v0, %v1998_v32  ;;  %v2001_v30 = vadd.f32 %v2796_v17, %v4967_v61  ;;  %v2908_v6 = vadd.f32 %v2907_v23, %v2906_v10 }
 0x267   : > { %2243 = vst [vmem:[%s4971_s18 + $0x70] sm:$0xff] %v2159_v15  ;;  %v2162_v57 = vadd.f32 %v2908_v6, %v2001_v30 }
 0x269   : > { %2244 = vst [vmem:[%s4971_s18 + $0x78] sm:$0xff] %v2162_v57 }
 0x26c   : > { %v2797_v18 = vpop.f32.mrb[96].mxu0 }
 0x26d   : > { %v2798_v44 = vpop.f32.mrb[97].mxu0 }
 0x26e   : > { %v2799_v58 = vadd.f32 %v2798_v44, %v2797_v18  ;;  %v2800_v4 = vpop.f32.mrb[98].mxu0 }
 0x26f   : > { %v2909_v53 = vpop.f32.mrb[96].mxu1  ;;  %v2801_v19 = vpop.f32.mrb[99].mxu0 }
 0x270   : > { %v2006_v50 = vadd.f32 %v2799_v58, %v4967_v61  ;;  %v2910_v62 = vpop.f32.mrb[97].mxu1  ;;  %v2802_v56 = vadd.f32 %v2801_v19, %v2800_v4 }
 0x271   : > { %v2911_v54 = vadd.f32 %v2910_v62, %v2909_v53  ;;  %v2912_v31 = vpop.f32.mrb[98].mxu1 }
 0x272   : > { %v2009_v26 = vadd.f32 %v2802_v56, %v4967_v61  ;;  %v2913_v33 = vpop.f32.mrb[99].mxu1 }
 0x273   : > { %v2167_v2 = vadd.f32 %v2911_v54, %v2006_v50  ;;  %v2914_v43 = vadd.f32 %v2913_v33, %v2912_v31 }
 0x275   : > { %2245 = vst [vmem:[%s4971_s18 + $0x80] sm:$0xff] %v2167_v2  ;;  %v2170_v41 = vadd.f32 %v2914_v43, %v2009_v26 }
 0x277   : > { %2246 = vst [vmem:[%s4971_s18 + $0x88] sm:$0xff] %v2170_v41 }
 0x279   : > { %v2803_v59 = vpop.f32.mrb[100].mxu0 }
 0x27a   : > { %v2804_v7 = vpop.f32.mrb[101].mxu0 }
 0x27b   : > { %v2915_v37 = vpop.f32.mrb[100].mxu1  ;;  %v2805_v8 = vadd.f32 %v2804_v7, %v2803_v59  ;;  %v2806_v27 = vpop.f32.mrb[102].mxu0 }
 0x27c   : > { %v2916_v42 = vpop.f32.mrb[101].mxu1  ;;  %v2807_v3 = vpop.f32.mrb[103].mxu0 }
 0x27d   : > { %v2014_v48 = vadd.f32 %v2805_v8, %v4967_v61  ;;  %v2917_v52 = vadd.f32 %v2916_v42, %v2915_v37  ;;  %v2918_v29 = vpop.f32.mrb[102].mxu1  ;;  %v2808_v60 = vadd.f32 %v2807_v3, %v2806_v27 }
 0x27e   : > { %v2919_v5 = vpop.f32.mrb[103].mxu1 }
 0x27f   : > { %v2175_v39 = vadd.f32 %v2917_v52, %v2014_v48  ;;  %v2017_v13 = vadd.f32 %v2808_v60, %v4967_v61  ;;  %v2920_v34 = vadd.f32 %v2919_v5, %v2918_v29 }
 0x281   : > { %2247 = vst [vmem:[%s4971_s18 + $0x90] sm:$0xff] %v2175_v39  ;;  %v2178_v22 = vadd.f32 %v2920_v34, %v2017_v13 }
 0x283   : > { %2248 = vst [vmem:[%s4971_s18 + $0x98] sm:$0xff] %v2178_v22 }
 0x286   : > { %v2809_v14 = vpop.f32.mrb[104].mxu0 }
 0x287   : > { %v2810_v35 = vpop.f32.mrb[105].mxu0 }
 0x288   : > { %v2811_v55 = vadd.f32 %v2810_v35, %v2809_v14  ;;  %v2812_v20 = vpop.f32.mrb[106].mxu0 }
 0x289   : > { %v2921_v24 = vpop.f32.mrb[104].mxu1  ;;  %v2813_v63 = vpop.f32.mrb[107].mxu0 }
 0x28a   : > { %v2022_v49 = vadd.f32 %v2811_v55, %v4967_v61  ;;  %v2922_v16 = vpop.f32.mrb[105].mxu1  ;;  %v2814_v38 = vadd.f32 %v2813_v63, %v2812_v20 }
 0x28b   : > { %v2923_v36 = vadd.f32 %v2922_v16, %v2921_v24  ;;  %v2924_v9 = vpop.f32.mrb[106].mxu1 }
 0x28c   : > { %v2025_v11 = vadd.f32 %v2814_v38, %v4967_v61  ;;  %v2925_v25 = vpop.f32.mrb[107].mxu1 }
 0x28d   : > { %v2183_v51 = vadd.f32 %v2923_v36, %v2022_v49  ;;  %v2926_v46 = vadd.f32 %v2925_v25, %v2924_v9 }
 0x28f   : > { %2249 = vst [vmem:[%s4971_s18 + $0xa0] sm:$0xff] %v2183_v51  ;;  %v2186_v47 = vadd.f32 %v2926_v46, %v2025_v11 }
 0x291   : > { %2250 = vst [vmem:[%s4971_s18 + $0xa8] sm:$0xff] %v2186_v47 }
 0x293   : > { %v2815_v1 = vpop.f32.mrb[108].mxu0 }
 0x294   : > { %v2816_v21 = vpop.f32.mrb[109].mxu0 }
 0x295   : > { %v2927_v12 = vpop.f32.mrb[108].mxu1  ;;  %v2817_v28 = vadd.f32 %v2816_v21, %v2815_v1  ;;  %v2818_v45 = vpop.f32.mrb[110].mxu0 }
 0x296   : > { %v2928_v40 = vpop.f32.mrb[109].mxu1  ;;  %v2819_v32 = vpop.f32.mrb[111].mxu0 }
 0x297   : > { %v2030_v0 = vadd.f32 %v2817_v28, %v4967_v61  ;;  %v2929_v10 = vadd.f32 %v2928_v40, %v2927_v12  ;;  %v2930_v17 = vpop.f32.mrb[110].mxu1  ;;  %v2820_v23 = vadd.f32 %v2819_v32, %v2818_v45 }
 0x298   : > { %v2931_v15 = vpop.f32.mrb[111].mxu1 }
 0x299   : > { %v2191_v30 = vadd.f32 %v2929_v10, %v2030_v0  ;;  %v2033_v6 = vadd.f32 %v2820_v23, %v4967_v61  ;;  %v2932_v57 = vadd.f32 %v2931_v15, %v2930_v17 }
 0x29b   : > { %2251 = vst [vmem:[%s4971_s18 + $0xb0] sm:$0xff] %v2191_v30  ;;  %v2194_v18 = vadd.f32 %v2932_v57, %v2033_v6 }
 0x29d   : > { %2252 = vst [vmem:[%s4971_s18 + $0xb8] sm:$0xff] %v2194_v18 }
 0x2a0   : > { %v2821_v44 = vpop.f32.mrb[112].mxu0 }
 0x2a1   : > { %v2822_v58 = vpop.f32.mrb[113].mxu0 }
 0x2a2   : > { %v2823_v4 = vadd.f32 %v2822_v58, %v2821_v44  ;;  %v2824_v53 = vpop.f32.mrb[114].mxu0  ;;  %v2933_v19 = vpop.f32.mrb[112].mxu1 }
 0x2a3   : > { %v2825_v50 = vpop.f32.mrb[115].mxu0  ;;  %v2934_v56 = vpop.f32.mrb[113].mxu1 }
 0x2a4   : > { %v2038_v62 = vadd.f32 %v2823_v4, %v4967_v61  ;;  %v2826_v54 = vadd.f32 %v2825_v50, %v2824_v53  ;;  %v2935_v31 = vadd.f32 %v2934_v56, %v2933_v19  ;;  %v2936_v26 = vpop.f32.mrb[114].mxu1 }
 0x2a5   : > { %v2937_v2 = vpop.f32.mrb[115].mxu1 }
 0x2a6   : > { %v2041_v33 = vadd.f32 %v2826_v54, %v4967_v61  ;;  %v2199_v43 = vadd.f32 %v2935_v31, %v2038_v62  ;;  %v2938_v41 = vadd.f32 %v2937_v2, %v2936_v26 }
 0x2a8   : > { %v2827_v59 = vpop.f32.mrb[116].mxu0  ;;  %2253 = vst [vmem:[%s4971_s18 + $0xc0] sm:$0xff] %v2199_v43  ;;  %v2202_v7 = vadd.f32 %v2938_v41, %v2041_v33 }
 0x2a9   : > { %v2828_v37 = vpop.f32.mrb[117].mxu0 }
 0x2aa   : > { %v2829_v8 = vadd.f32 %v2828_v37, %v2827_v59  ;;  %v2830_v27 = vpop.f32.mrb[118].mxu0  ;;  %2254 = vst [vmem:[%s4971_s18 + $0xc8] sm:$0xff] %v2202_v7  ;;  %v2939_v42 = vpop.f32.mrb[116].mxu1 }
 0x2ab   : > { %v2831_v3 = vpop.f32.mrb[119].mxu0  ;;  %v2940_v52 = vpop.f32.mrb[117].mxu1 }
 0x2ac   : > { %v2046_v48 = vadd.f32 %v2829_v8, %v4967_v61  ;;  %v2832_v29 = vadd.f32 %v2831_v3, %v2830_v27  ;;  %v2941_v60 = vadd.f32 %v2940_v52, %v2939_v42  ;;  %v2942_v5 = vpop.f32.mrb[118].mxu1 }
 0x2ad   : > { %v2943_v13 = vpop.f32.mrb[119].mxu1 }
 0x2ae   : > { %v2049_v39 = vadd.f32 %v2832_v29, %v4967_v61  ;;  %v2207_v34 = vadd.f32 %v2941_v60, %v2046_v48  ;;  %v2944_v22 = vadd.f32 %v2943_v13, %v2942_v5 }
 0x2b0   : > { %v2833_v14 = vpop.f32.mrb[120].mxu0  ;;  %2255 = vst [vmem:[%s4971_s18 + $0xd0] sm:$0xff] %v2207_v34  ;;  %v2210_v35 = vadd.f32 %v2944_v22, %v2049_v39 }
 0x2b1   : > { %v2834_v55 = vpop.f32.mrb[121].mxu0 }
 0x2b2   : > { %v2835_v20 = vadd.f32 %v2834_v55, %v2833_v14  ;;  %v2836_v24 = vpop.f32.mrb[122].mxu0  ;;  %2256 = vst [vmem:[%s4971_s18 + $0xd8] sm:$0xff] %v2210_v35  ;;  %v2945_v63 = vpop.f32.mrb[120].mxu1 }
 0x2b3   : > { %v2837_v49 = vpop.f32.mrb[123].mxu0  ;;  %v2946_v38 = vpop.f32.mrb[121].mxu1 }
 0x2b4   : > { %v2054_v16 = vadd.f32 %v2835_v20, %v4967_v61  ;;  %v2838_v36 = vadd.f32 %v2837_v49, %v2836_v24  ;;  %v2947_v9 = vadd.f32 %v2946_v38, %v2945_v63  ;;  %v2948_v11 = vpop.f32.mrb[122].mxu1 }
 0x2b5   : > { %v2949_v51 = vpop.f32.mrb[123].mxu1 }
 0x2b6   : > { %v2057_v25 = vadd.f32 %v2838_v36, %v4967_v61  ;;  %v2215_v46 = vadd.f32 %v2947_v9, %v2054_v16  ;;  %v2950_v47 = vadd.f32 %v2949_v51, %v2948_v11 }
 0x2b8   : > { %v2839_v1 = vpop.f32.mrb[124].mxu0  ;;  %2257 = vst [vmem:[%s4971_s18 + $0xe0] sm:$0xff] %v2215_v46  ;;  %v2218_v21 = vadd.f32 %v2950_v47, %v2057_v25 }
 0x2b9   : > { %v2840_v12 = vpop.f32.mrb[125].mxu0 }
 0x2ba   : > { %v2841_v28 = vadd.f32 %v2840_v12, %v2839_v1  ;;  %v2842_v45 = vpop.f32.mrb[126].mxu0  ;;  %2258 = vst [vmem:[%s4971_s18 + $0xe8] sm:$0xff] %v2218_v21  ;;  %v2951_v40 = vpop.f32.mrb[124].mxu1 }
 0x2bb   : > { %v2843_v32 = vpop.f32.mrb[127].mxu0  ;;  %v2952_v10 = vpop.f32.mrb[125].mxu1 }
 0x2bc   : > { %v2062_v0 = vadd.f32 %v2841_v28, %v4967_v61  ;;  %v2844_v17 = vadd.f32 %v2843_v32, %v2842_v45  ;;  %v2953_v23 = vadd.f32 %v2952_v10, %v2951_v40  ;;  %v2954_v15 = vpop.f32.mrb[126].mxu1  ;;  %2267 = sbr.rel (!%p3565_p3) target bundleno = 763 (0x2fb), region = 44 }
 0x2bd   : > { %v2955_v6 = vpop.f32.mrb[127].mxu1 }
 0x2be   : > { %v2065_v30 = vadd.f32 %v2844_v17, %v4967_v61  ;;  %v2223_v57 = vadd.f32 %v2953_v23, %v2062_v0  ;;  %v2956_v18 = vadd.f32 %v2955_v6, %v2954_v15 }
 0x2c0   : > { %2259 = vst [vmem:[%s4971_s18 + $0xf0] sm:$0xff] %v2223_v57  ;;  %v2226_v44 = vadd.f32 %v2956_v18, %v2065_v30 }
 0x2c2   : > { %2260 = vst [vmem:[%s4971_s18 + $0xf8] sm:$0xff] %v2226_v44 }
 0x2c3   : > { %s5286_s15 = smov (!%p2270_p9, %s2269_s15), 32 }
 0x2c4   : > { %s2715_s7 = sshll.u32 %s5286_s15, 7 }
 0x2c5   : > { %p2718_p10 = scmp.eq.s32.totalorder %s2715_s7, 0 }
 0x2c6   : > { %s5048_s8 = sshrl.u32 (!%p2718_p10), %s5286_s15, 5 }
 0x2c7   : > { %2279 = sbr.rel (%p2718_p10) target bundleno = 763 (0x2fb), region = 48  ;;  %p2719_p11 = scmp.le.s32.totalorder (!%p2718_p10), %s5048_s8, 0 }
 0x2ce   : > { %2568 = sbr.rel (%p2719_p11) target bundleno = 742 (0x2e6), region = 130  ;;  %s5274_s20 = smov (!%p2719_p11), %s5042_s6 }
 0x2cf   : > { %s5275_s26 = smov (!%p2719_p11), %s4971_s18  ;;  %s5057_s17 = smov (!%p2719_p11), 0  }
 0x2d0   : > { %s5059_s9 = smov (!%p2719_p11), 0  }
 0x2d5 LB: >> { %v2403_v61 = vld [vmem:[%s3476_s26] sm:$0xff]  ;;  %v2405_v58 = vld [vmem:[%s3476_s26 + $0x8] sm:$0xff]  ;;  %v2407_v4 = vld [vmem:[%s3476_s26 + $0x10] sm:$0xff]  ;;  %s2467_s10 = sadd.s32 1, %s3480_s17  ;;  %s2397_s9 = sadd.s32 1, %s3484_s9   ;;  %s3484_s9 = sphi %s5059_s9, %s2397_s9   ;;  %s3480_s17 = sphi %s5057_s17, %s5278_s17   ;;  %s3476_s26 = sphi %s5275_s26, %s5277_s26   ;;  %s3472_s20 = sphi %s5274_s20, %s5276_s20  }
 0x2d6   : >> { %2404 = vst [vmem:[%s3472_s20] sm:$0xff] %v2403_v61  ;;  %2406 = vst [vmem:[%s3472_s20 + $0x8] sm:$0xff] %v2405_v58  ;;  %v2409_v53 = vld [vmem:[%s3476_s26 + $0x18] sm:$0xff]  ;;  %v2411_v19 = vld [vmem:[%s3476_s26 + $0x20] sm:$0xff]  ;;  %p2468_p12 = scmp.ge.s32.totalorder %s2467_s10, %s5048_s8  ;;  %p2396_p13 = scmp.ge.s32.totalorder %s2397_s9, %s5048_s8 }
 0x2d7   : >> { %2408 = vst [vmem:[%s3472_s20 + $0x10] sm:$0xff] %v2407_v4  ;;  %v2413_v50 = vld [vmem:[%s3476_s26 + $0x28] sm:$0xff]  ;;  %2410 = vst [vmem:[%s3472_s20 + $0x18] sm:$0xff] %v2409_v53  ;;  %v2415_v62 = vld [vmem:[%s3476_s26 + $0x30] sm:$0xff] }
 0x2d8   : >> { %2412 = vst [vmem:[%s3472_s20 + $0x20] sm:$0xff] %v2411_v19  ;;  %2414 = vst [vmem:[%s3472_s20 + $0x28] sm:$0xff] %v2413_v50  ;;  %v2417_v56 = vld [vmem:[%s3476_s26 + $0x38] sm:$0xff]  ;;  %v2419_v54 = vld [vmem:[%s3476_s26 + $0x40] sm:$0xff]  ;;  %s5288_s10 = smov (%p2468_p12, %s2467_s10), 0 }
 0x2d9   : >> { %2416 = vst [vmem:[%s3472_s20 + $0x30] sm:$0xff] %v2415_v62  ;;  %2418 = vst [vmem:[%s3472_s20 + $0x38] sm:$0xff] %v2417_v56  ;;  %v2421_v31 = vld [vmem:[%s3476_s26 + $0x48] sm:$0xff]  ;;  %v2423_v26 = vld [vmem:[%s3476_s26 + $0x50] sm:$0xff]  ;;  %s2720_s11 = sshll.u32 %s5288_s10, 8  ;;  %s5278_s17 = smov %s5288_s10 }
 0x2da   : >> { %2420 = vst [vmem:[%s3472_s20 + $0x40] sm:$0xff] %v2419_v54  ;;  %v2425_v33 = vld [vmem:[%s3476_s26 + $0x58] sm:$0xff]  ;;  %2422 = vst [vmem:[%s3472_s20 + $0x48] sm:$0xff] %v2421_v31  ;;  %v2427_v2 = vld [vmem:[%s3476_s26 + $0x60] sm:$0xff]  ;;  %s5115_s12 = scalar_lea.vmem %s4971_s18, %s2720_s11 [#allocation2]   ;;  %s2473_s13 = scalar_lea.vmem %s5042_s6, %s2720_s11  }
 0x2db   : >> { %2424 = vst [vmem:[%s3472_s20 + $0x50] sm:$0xff] %v2423_v26  ;;  %2426 = vst [vmem:[%s3472_s20 + $0x58] sm:$0xff] %v2425_v33  ;;  %v2429_v43 = vld [vmem:[%s3476_s26 + $0x68] sm:$0xff]  ;;  %v2431_v41 = vld [vmem:[%s3476_s26 + $0x70] sm:$0xff] }
 0x2dc   : >> { %2428 = vst [vmem:[%s3472_s20 + $0x60] sm:$0xff] %v2427_v2  ;;  %2430 = vst [vmem:[%s3472_s20 + $0x68] sm:$0xff] %v2429_v43  ;;  %v2433_v59 = vld [vmem:[%s3476_s26 + $0x78] sm:$0xff]  ;;  %v2435_v7 = vld [vmem:[%s3476_s26 + $0x80] sm:$0xff] }
 0x2dd   : >> { %2432 = vst [vmem:[%s3472_s20 + $0x70] sm:$0xff] %v2431_v41  ;;  %v2437_v37 = vld [vmem:[%s3476_s26 + $0x88] sm:$0xff]  ;;  %2434 = vst [vmem:[%s3472_s20 + $0x78] sm:$0xff] %v2433_v59  ;;  %v2439_v8 = vld [vmem:[%s3476_s26 + $0x90] sm:$0xff] }
 0x2de   : >> { %2436 = vst [vmem:[%s3472_s20 + $0x80] sm:$0xff] %v2435_v7  ;;  %2438 = vst [vmem:[%s3472_s20 + $0x88] sm:$0xff] %v2437_v37  ;;  %v2441_v27 = vld [vmem:[%s3476_s26 + $0x98] sm:$0xff]  ;;  %v2443_v42 = vld [vmem:[%s3476_s26 + $0xa0] sm:$0xff] }
 0x2df   : >> { %2440 = vst [vmem:[%s3472_s20 + $0x90] sm:$0xff] %v2439_v8  ;;  %2442 = vst [vmem:[%s3472_s20 + $0x98] sm:$0xff] %v2441_v27  ;;  %v2445_v3 = vld [vmem:[%s3476_s26 + $0xa8] sm:$0xff]  ;;  %v2447_v48 = vld [vmem:[%s3476_s26 + $0xb0] sm:$0xff]  ;;  %2399 = sbr.rel (!%p2396_p13) target bundleno = 725 (0x2d5), region = 136 }
 0x2e0   : >> { %2444 = vst [vmem:[%s3472_s20 + $0xa0] sm:$0xff] %v2443_v42  ;;  %v2449_v52 = vld [vmem:[%s3476_s26 + $0xb8] sm:$0xff]  ;;  %2446 = vst [vmem:[%s3472_s20 + $0xa8] sm:$0xff] %v2445_v3  ;;  %v2451_v29 = vld [vmem:[%s3476_s26 + $0xc0] sm:$0xff] }
 0x2e1   : >> { %2448 = vst [vmem:[%s3472_s20 + $0xb0] sm:$0xff] %v2447_v48  ;;  %2450 = vst [vmem:[%s3472_s20 + $0xb8] sm:$0xff] %v2449_v52  ;;  %v2453_v60 = vld [vmem:[%s3476_s26 + $0xc8] sm:$0xff]  ;;  %v2455_v5 = vld [vmem:[%s3476_s26 + $0xd0] sm:$0xff] }
 0x2e2   : >> { %2452 = vst [vmem:[%s3472_s20 + $0xc0] sm:$0xff] %v2451_v29  ;;  %2454 = vst [vmem:[%s3472_s20 + $0xc8] sm:$0xff] %v2453_v60  ;;  %v2457_v39 = vld [vmem:[%s3476_s26 + $0xd8] sm:$0xff]  ;;  %v2459_v13 = vld [vmem:[%s3476_s26 + $0xe0] sm:$0xff] }
 0x2e3   : >> { %2456 = vst [vmem:[%s3472_s20 + $0xd0] sm:$0xff] %v2455_v5  ;;  %v2461_v34 = vld [vmem:[%s3476_s26 + $0xe8] sm:$0xff]  ;;  %2458 = vst [vmem:[%s3472_s20 + $0xd8] sm:$0xff] %v2457_v39  ;;  %v2463_v22 = vld [vmem:[%s3476_s26 + $0xf0] sm:$0xff] }
 0x2e4   : >> { %2460 = vst [vmem:[%s3472_s20 + $0xe0] sm:$0xff] %v2459_v13  ;;  %2462 = vst [vmem:[%s3472_s20 + $0xe8] sm:$0xff] %v2461_v34  ;;  %v2465_v14 = vld [vmem:[%s3476_s26 + $0xf8] sm:$0xff]  ;;  %s5277_s26 = smov %s5115_s12 }
 0x2e5   : >> { %2464 = vst [vmem:[%s3472_s20 + $0xf0] sm:$0xff] %v2463_v22  ;;  %2466 = vst [vmem:[%s3472_s20 + $0xf8] sm:$0xff] %v2465_v14  ;;  %s5276_s20 = smov %s2473_s13 }
 0x2e6 PF: > { %s5156_s27 = sand.u32 31, %s5286_s15   ;;  %s2731_s14 = sshll.u32 %s5048_s8, 8 }
 0x2e7   : > { %s2478_s16 = scalar_lea.vmem %s4971_s18, %s2731_s14 [#allocation2]   ;;  %s2480_s23 = scalar_lea.vmem %s5042_s6, %s2731_s14  }
 0x2e8   : > { %p2725_p0 = scmp.le.s32.totalorder %s5156_s27, 0 }
 0x2e9   : > { %s3486_s25 = smov (!%p2725_p0), %s2480_s23   ;;  %s3490_s29 = smov (!%p2725_p0), %s2478_s16  }
 0x2ea   : > { %2582 = sbr.rel (%p2725_p0) target bundleno = 763 (0x2fb), region = 141  ;;  %s3494_s30 = smov (!%p2725_p0), 0  }
 0x2eb   : > { %s3498_s7 = smov (!%p2725_p0), 0  }
 0x2f1 LB: >> { %v2490_v35 = vld [vmem:[%s3492_s29] sm:$0xff]  ;;  %s2492_s15 = sadd.s32 1, %s3496_s30  ;;  %s2484_s7 = sadd.s32 1, %s3500_s7   ;;  %s3500_s7 = sphi %s3498_s7, %s2484_s7   ;;  %s3496_s30 = sphi %s3494_s30, %s3495_s30   ;;  %s3492_s29 = sphi %s3490_s29, %s2497_s29   ;;  %s3488_s25 = sphi %s3486_s25, %s2498_s25  }
 0x2f2   : >> { %2491 = vst [vmem:[%s3488_s25] sm:$0xff] %v2490_v35  ;;  %p2493_p1 = scmp.ge.s32.totalorder %s2492_s15, %s5156_s27  ;;  %p2483_p2 = scmp.ge.s32.totalorder %s2484_s7, %s5156_s27 }
 0x2f4   : >> { %s5290_s15 = smov (%p2493_p1, %s2492_s15), 0  ;;  %2486 = sbr.rel (!%p2483_p2) target bundleno = 753 (0x2f1), region = 147 }
 0x2f5   : >> { %s2726_s18 = sshll.u32 %s5290_s15, 3  ;;  %s3495_s30 = smov %s5290_s15  }
 0x2f6   : >> { %s2497_s29 = scalar_lea.vmem %s2478_s16, %s2726_s18 [#allocation2]   ;;  %s2498_s25 = scalar_lea.vmem %s2480_s23, %s2726_s18  }
 0x2fb PF: > { %s15_s22 = sadd.s32 1, %s3468_s22   ;;  %s5279_s18 = smov %s3456_s19 }
 0x2fc   : > { %p12_p3 = scmp.ge.s32.totalorder %s15_s22, 4   ;;  %s5280_s19 = smov %s3574_s28 }
 0x2fd   : > { %s5281_s20 = smov %s3464_s21  ;;  %s5282_s21 = smov %s5284_s24 }
 0x2fe   :  { %14 = sbr.rel (!%p12_p3) target bundleno = 3 (0x3), region = 158 }

</bundles_post_ra>
